<compile_context>
chip_gen: v6e
topology: v6e:2x2x1
jax: 0.10.0
libtpu: 0.0.40
codegen_flags: <defaults>
</compile_context>

<pallas_src>
import jax
import jax.numpy as jnp
from jax import lax
from jax.experimental import pallas as pl
from jax.experimental.pallas import tpu as pltpu

H = 64        # rnn_unit (hidden size per direction)
L = 136       # GRU input_size (landmark features)
NCLS = 2      # output classes
G = 3 * H     # fused gate width (r | z | n)
ALIGN = 16    # batch-tile alignment (bf16 sublane packing = 16 rows)


def _round_up(x, m):
    return (x + m - 1) // m * m


def _vmem_capacity_bytes():
    try:
        info = pltpu.get_tpu_info()
        return int(getattr(info, "vmem_capacity_bytes", 64 << 20))
    except Exception:
        return 64 << 20


def _pick_batch_tile(batch, seq_len):
    """Generation-aware batch tile: keep one tile's live set well under VMEM."""
    budget = _vmem_capacity_bytes() // 4
    lane_l = _round_up(L, 128)
    lane_g = _round_up(G, 128)
    per_row = seq_len * (2 * lane_l * 2 + lane_g * 4) + 4 * lane_l + 4096
    max_tile = max(ALIGN, min(1024, (budget // max(per_row, 1)) // ALIGN * ALIGN))
    b_aligned = _round_up(max(batch, 1), ALIGN)
    if b_aligned <= max_tile:
        return b_aligned, 1
    n_tiles = -(-b_aligned // max_tile)
    b_tile = _round_up(-(-b_aligned // n_tiles), ALIGN)
    return b_tile, n_tiles


# ------------------------------ kernel --------------------------------------
def lrnet_kernel(x_ref, xl_ref,
                 wih_f_ref, whh_f_ref, bxf_ref, bhnf_ref,
                 wih_b_ref, bxb_ref, bhnb_ref,
                 w1f_ref, w1b_ref, b1_ref, w2_ref, b2_ref,
                 out_ref, gates_ref):
    Bt = xl_ref.shape[0]
    T = x_ref.shape[0] // Bt           # x_ref is time-major (T*Bt, L), no reshape

    # ---- Hoisted fused input projection (forward direction) ---------------
    # One lane-dense bf16 MXU matmul for all r/z/n input gates of every step;
    # bias already contains the pre-summed r/z hidden biases.  Result goes to a
    # VMEM f32 scratch so the recurrence reads contiguous rows per step.
    gates_ref[...] = (
        jnp.dot(x_ref[...], wih_f_ref[...], preferred_element_type=jnp.float32)
        + bxf_ref[...])                                          # (T*Bt, 3H) f32

    whh_f = whh_f_ref[...]                                       # (H, 3H) bf16
    bhn_f = jnp.broadcast_to(bhnf_ref[...], (Bt, H))             # hoisted broadcast

    # ---- Recurrence: fori_loop over a time-major slab ----------------------
    def step(t, h):
        base = pl.multiple_of(t * Bt, Bt)                        # Bt is 16-aligned
        g_x = gates_ref[pl.ds(base, Bt), :]                      # contiguous (Bt, 3H)
        g_h = jnp.dot(h.astype(jnp.bfloat16), whh_f,
                      preferred_element_type=jnp.float32)        # (Bt, 3H)
        rz = jax.nn.sigmoid(g_x[:, :2 * H] + g_h[:, :2 * H])     # fused r|z sigmoid
        r = rz[:, :H]
        z = rz[:, H:]
        n = jnp.tanh(g_x[:, 2 * H:] + r * (g_h[:, 2 * H:] + bhn_f))
        return (1.0 - z) * n + z * h                             # f32 carry

    h_fwd = lax.fori_loop(0, T, step, jnp.zeros((Bt, H), jnp.float32),
                          unroll=min(T, 8))

    # ---- Backward direction at the last output position --------------------
    # gru(x)[0][:, -1, H:] is a single reverse step on x[T-1] from h0 = 0:
    # hidden-side matmul vanishes, only (folded) biases remain.
    gxb = (jnp.dot(xl_ref[...], wih_b_ref[...], preferred_element_type=jnp.float32)
           + bxb_ref[...])                                       # (Bt, 3H)
    rzb = jax.nn.sigmoid(gxb[:, :2 * H])
    rb = rzb[:, :H]
    zb = rzb[:, H:]
    nb = jnp.tanh(gxb[:, 2 * H:] + rb * jnp.broadcast_to(bhnb_ref[...], (Bt, H)))
    h_bwd = (1.0 - zb) * nb

    # ---- Classifier head ----------------------------------------------------
    hid = (jnp.dot(h_fwd.astype(jnp.bfloat16), w1f_ref[...],
                   preferred_element_type=jnp.float32)
           + jnp.dot(h_bwd.astype(jnp.bfloat16), w1b_ref[...],
                     preferred_element_type=jnp.float32)
           + b1_ref[...])
    hid = jnp.maximum(hid, 0.0)                                  # ReLU
    logits = (jnp.dot(hid.astype(jnp.bfloat16), w2_ref[...],
                      preferred_element_type=jnp.float32)
              + b2_ref[...])                                     # (Bt, 2)

    m = jnp.max(logits, axis=-1, keepdims=True)
    e = jnp.exp(logits - m)
    out_ref[...] = e * pl.reciprocal(jnp.sum(e, axis=-1, keepdims=True),
                                     approx=True)


# ------------------------------ wrapper --------------------------------------
def lrnet_forward(x, params):
    """x: (B, T, 136) float32, batch_first (same layout as the PyTorch module)."""
    B, T, Lx = x.shape
    assert Lx == L
    Bt, n_tiles = _pick_batch_tile(B, T)
    B_pad = Bt * n_tiles

    # All layout prep is XLA-side (free vs. kernel cost): pad B, build per-tile
    # time-major slabs, cast to bf16 (halves HBM->VMEM bytes for x).
    xp = x if B_pad == B else jnp.pad(x, ((0, B_pad - B), (0, 0), (0, 0)))
    x_tm = (xp.reshape(n_tiles, Bt, T, L)
              .transpose(0, 2, 1, 3)
              .reshape(n_tiles, T * Bt, L)
              .astype(jnp.bfloat16))                              # (n_tiles, T*Bt, L)
    x_last = xp[:, T - 1, :].reshape(n_tiles, Bt, L).astype(jnp.bfloat16)

    inputs = (x_tm, x_last) + tuple(params)

    def rep_spec(a):
        nd = a.ndim
        return pl.BlockSpec(a.shape, lambda i, _nd=nd: (0,) * _nd)

    in_specs = [
        pl.BlockSpec((None, T * Bt, L), lambda i: (i, 0, 0)),     # x tile (2D in kernel)
        pl.BlockSpec((None, Bt, L), lambda i: (i, 0, 0)),         # x[:, -1, :] tile
    ] + [rep_spec(p) for p in params]
    out_specs = pl.BlockSpec((Bt, NCLS), lambda i: (i, 0))

    # VMEM limit from the actual resident set (lane-padded), not a blind cap.
    lane_l = _round_up(L, 128)
    lane_g = _round_up(G, 128)
    weight_bytes = sum(int(p.size * p.dtype.itemsize) for p in params)
    x_tile_bytes = T * Bt * lane_l * 2
    xlast_bytes = Bt * lane_l * 2
    gates_bytes = T * Bt * lane_g * 4
    out_bytes_tile = Bt * 128 * 4
    resident = (2 * (x_tile_bytes + xlast_bytes + out_bytes_tile)
                + gates_bytes + 2 * weight_bytes)
    vmem_limit = int(min(_vmem_capacity_bytes(),
                         max(32 << 20, resident + (8 << 20))))

    flops = int(2 * B_pad * T * L * G            # hoisted fused input projection
                + 2 * T * B_pad * H * G          # recurrent hidden projections
                + 2 * B_pad * L * G              # backward-direction single step
                + 2 * B_pad * H * H * 2          # linear_1 (two halves)
                + 2 * B_pad * H * NCLS)          # linear_2
    transcendentals = int((T + 1) * B_pad * G + B_pad * (NCLS + 1))
    bytes_in = sum(int(a.size * a.dtype.itemsize) for a in inputs)
    bytes_out = int(B_pad * NCLS * 4)

    out = pl.pallas_call(
        lrnet_kernel,
        out_shape=jax.ShapeDtypeStruct((B_pad, NCLS), jnp.float32),
        grid_spec=pltpu.PrefetchScalarGridSpec(
            num_scalar_prefetch=0,
            grid=(n_tiles,),
            in_specs=in_specs,
            out_specs=out_specs,
            scratch_shapes=[pltpu.VMEM((T * Bt, G), jnp.float32)]),
        compiler_params=pltpu.CompilerParams(
            dimension_semantics=("parallel",),
            vmem_limit_bytes=vmem_limit),
        cost_estimate=pl.CostEstimate(flops=flops,
                                      transcendentals=transcendentals,
                                      bytes_accessed=bytes_in + bytes_out),
    )(*inputs)
    return out[:B]


# --------------------------- parameters ------------------------------------
def init_raw_params(key):
    """PyTorch-shaped raw parameters, gate order (r, z, n), f32."""
    ks = jax.random.split(key, 12)
    kg = 1.0 / jnp.sqrt(jnp.float32(H))
    k1 = 1.0 / jnp.sqrt(jnp.float32(2 * H))

    def u(k, shape, bound):
        return jax.random.uniform(k, shape, jnp.float32, -bound, bound)

    return dict(
        w_ih_f=u(ks[0], (G, L), kg), w_hh_f=u(ks[1], (G, H), kg),
        b_ih_f=u(ks[2], (G,), kg),   b_hh_f=u(ks[3], (G,), kg),
        w_ih_b=u(ks[4], (G, L), kg), w_hh_b=u(ks[5], (G, H), kg),
        b_ih_b=u(ks[6], (G,), kg),   b_hh_b=u(ks[7], (G,), kg),
        w1=u(ks[8], (H, 2 * H), k1), b1=u(ks[9], (H,), k1),
        w2=u(ks[10], (NCLS, H), kg), b2=u(ks[11], (NCLS,), kg),
    )


def pack_params(raw):
    """Fuse gates, pre-sum r/z biases, transpose to (in, out), cast weights bf16."""
    def fuse_bias(b_ih, b_hh):
        # r/z hidden biases fold into the hoisted input projection; the n-gate
        # hidden bias stays separate (it sits inside r * (...)).
        bx = b_ih + jnp.concatenate([b_hh[:2 * H], jnp.zeros((H,), jnp.float32)])
        return bx.reshape(1, G), b_hh[2 * H:].reshape(1, H)

    bxf, bhnf = fuse_bias(raw["b_ih_f"], raw["b_hh_f"])
    bxb, bhnb = fuse_bias(raw["b_ih_b"], raw["b_hh_b"])
    bf16 = jnp.bfloat16
    # NOTE: w_hh_b is mathematically unused for output[:, -1, :] because the
    # reverse direction starts from h0 = 0 at the last timestep.
    return (
        raw["w_ih_f"].T.astype(bf16),      # (L, 3H) fused [r|z|n]
        raw["w_hh_f"].T.astype(bf16),      # (H, 3H)
        bxf, bhnf,
        raw["w_ih_b"].T.astype(bf16),      # (L, 3H)
        bxb, bhnb,
        raw["w1"][:, :H].T.astype(bf16),   # linear_1, forward half
        raw["w1"][:, H:].T.astype(bf16),   # linear_1, backward half
        raw["b1"].reshape(1, H),
        raw["w2"].T.astype(bf16),          # (H, 2)
        raw["b2"].reshape(1, NCLS),
    )


# ----------------------------- references ----------------------------------
def lrnet_ref_packed(x, params):
    """Plain-JAX reference mirroring the kernel math/precision."""
    (wih_f, whh_f, bxf, bhnf, wih_b, bxb, bhnb, w1f, w1b, b1, w2, b2) = params
    B, T, _ = x.shape
    xb = x.astype(jnp.bfloat16)
    gx = (jnp.dot(xb.reshape(B * T, L), wih_f,
                  preferred_element_type=jnp.float32) + bxf)
    g3 = gx.reshape(B, T, G)
    h = jnp.zeros((B, H), jnp.float32)
    for t in range(T):
        g_x = g3[:, t, :]
        g_h = jnp.dot(h.astype(jnp.bfloat16), whh_f,
                      preferred_element_type=jnp.float32)
        r = jax.nn.sigmoid(g_x[:, :H] + g_h[:, :H])
        z = jax.nn.sigmoid(g_x[:, H:2 * H] + g_h[:, H:2 * H])
        n = jnp.tanh(g_x[:, 2 * H:] + r * (g_h[:, 2 * H:] + bhnf))
        h = (1.0 - z) * n + z * h
    gxb = jnp.dot(xb[:, T - 1, :], wih_b, preferred_element_type=jnp.float32) + bxb
    rb = jax.nn.sigmoid(gxb[:, :H])
    zb = jax.nn.sigmoid(gxb[:, H:2 * H])
    nb = jnp.tanh(gxb[:, 2 * H:] + rb * bhnb)
    hb = (1.0 - zb) * nb
    hid = jnp.maximum(
        jnp.dot(h.astype(jnp.bfloat16), w1f, preferred_element_type=jnp.float32)
        + jnp.dot(hb.astype(jnp.bfloat16), w1b, preferred_element_type=jnp.float32)
        + b1, 0.0)
    logits = jnp.dot(hid.astype(jnp.bfloat16), w2,
                     preferred_element_type=jnp.float32) + b2
    return jax.nn.softmax(logits, axis=1)


def lrnet_ref_f32(x, raw):
    """Unfused f32 PyTorch-semantics reference (eval mode)."""
    B, T, _ = x.shape

    def gru_cell(x_t, h, w_ih, w_hh, b_ih, b_hh):
        gi = x_t @ w_ih.T + b_ih
        gh = h @ w_hh.T + b_hh
        r = jax.nn.sigmoid(gi[:, :H] + gh[:, :H])
        z = jax.nn.sigmoid(gi[:, H:2 * H] + gh[:, H:2 * H])
        n = jnp.tanh(gi[:, 2 * H:] + r * gh[:, 2 * H:])
        return (1.0 - z) * n + z * h

    h = jnp.zeros((B, H), jnp.float32)
    for t in range(T):
        h = gru_cell(x[:, t, :], h, raw["w_ih_f"], raw["w_hh_f"],
                     raw["b_ih_f"], raw["b_hh_f"])
    hb = gru_cell(x[:, T - 1, :], jnp.zeros((B, H), jnp.float32),
                  raw["w_ih_b"], raw["w_hh_b"], raw["b_ih_b"], raw["b_hh_b"])
    hid = jnp.maximum(jnp.concatenate([h, hb], axis=1) @ raw["w1"].T + raw["b1"], 0.0)
    logits = hid @ raw["w2"].T + raw["b2"]
    return jax.nn.softmax(logits, axis=1)


if __name__ == "__main__":
    key = jax.random.PRNGKey(0)
    kx, kp = jax.random.split(key)

    B, T = 2, 8
    x = jax.random.normal(kx, (B, T, L), jnp.float32)   # (batch, frames, 136)
    raw = init_raw_params(kp)
    params = pack_params(raw)

    out = jax.block_until_ready(lrnet_forward(x, params))
    ref_matched = lrnet_ref_packed(x, params)            # same bf16/f32 recipe
    ref_full = lrnet_ref_f32(x, raw)                      # unfused f32 semantics

    assert out.shape == (B, NCLS)
    assert bool(jnp.all(jnp.isfinite(out)))
    assert jnp.allclose(jnp.sum(out, axis=1), 1.0, atol=5e-3)
    assert jnp.allclose(out, ref_matched, atol=3e-3, rtol=3e-3), (out, ref_matched)
    assert jnp.allclose(out, ref_full, atol=5e-2, rtol=5e-2), (out, ref_full)

    print("KERNEL_OK")
</pallas_src>

<mosaic_0001>
module attributes {stable_mosaic.version = 11 : i64} {
  func.func @lrnet_kernel(%arg0: i32, %arg1: memref<1x128x136xbf16, #tpu.memory_space<vmem>>, %arg2: memref<1x16x136xbf16, #tpu.memory_space<vmem>>, %arg3: memref<136x192xbf16, #tpu.memory_space<vmem>>, %arg4: memref<64x192xbf16, #tpu.memory_space<vmem>>, %arg5: memref<1x192xf32, #tpu.memory_space<vmem>>, %arg6: memref<1x64xf32, #tpu.memory_space<vmem>>, %arg7: memref<136x192xbf16, #tpu.memory_space<vmem>>, %arg8: memref<1x192xf32, #tpu.memory_space<vmem>>, %arg9: memref<1x64xf32, #tpu.memory_space<vmem>>, %arg10: memref<64x64xbf16, #tpu.memory_space<vmem>>, %arg11: memref<64x64xbf16, #tpu.memory_space<vmem>>, %arg12: memref<1x64xf32, #tpu.memory_space<vmem>>, %arg13: memref<64x2xbf16, #tpu.memory_space<vmem>>, %arg14: memref<1x2xf32, #tpu.memory_space<vmem>>, %arg15: memref<16x2xf32, #tpu.memory_space<vmem>>, %arg16: memref<128x192xf32, #tpu.memory_space<vmem>>) attributes {dimension_semantics = [#tpu.dimension_semantics<parallel>], iteration_bounds = array<i64: 1>, scalar_prefetch = 0 : i64, scratch_operands = 1 : i64, tpu.core_type = #tpu.core_type<tc>, window_params = [{transform_indices = @transform_0, window_bounds = array<i64: 1, 128, 136>}, {transform_indices = @transform_1, window_bounds = array<i64: 1, 16, 136>}, {pipeline_mode = #tpu.pipeline_mode<synchronous>, transform_indices = @transform_2, window_bounds = array<i64: 136, 192>}, {pipeline_mode = #tpu.pipeline_mode<synchronous>, transform_indices = @transform_3, window_bounds = array<i64: 64, 192>}, {pipeline_mode = #tpu.pipeline_mode<synchronous>, transform_indices = @transform_4, window_bounds = array<i64: 1, 192>}, {pipeline_mode = #tpu.pipeline_mode<synchronous>, transform_indices = @transform_5, window_bounds = array<i64: 1, 64>}, {pipeline_mode = #tpu.pipeline_mode<synchronous>, transform_indices = @transform_6, window_bounds = array<i64: 136, 192>}, {pipeline_mode = #tpu.pipeline_mode<synchronous>, transform_indices = @transform_7, window_bounds = array<i64: 1, 192>}, {pipeline_mode = #tpu.pipeline_mode<synchronous>, transform_indices = @transform_8, window_bounds = array<i64: 1, 64>}, {pipeline_mode = #tpu.pipeline_mode<synchronous>, transform_indices = @transform_9, window_bounds = array<i64: 64, 64>}, {pipeline_mode = #tpu.pipeline_mode<synchronous>, transform_indices = @transform_10, window_bounds = array<i64: 64, 64>}, {pipeline_mode = #tpu.pipeline_mode<synchronous>, transform_indices = @transform_11, window_bounds = array<i64: 1, 64>}, {pipeline_mode = #tpu.pipeline_mode<synchronous>, transform_indices = @transform_12, window_bounds = array<i64: 64, 2>}, {pipeline_mode = #tpu.pipeline_mode<synchronous>, transform_indices = @transform_13, window_bounds = array<i64: 1, 2>}, {transform_indices = @transform_14, window_bounds = array<i64: 16, 2>}]} {
    %c0 = arith.constant 0 : index
    %c0_0 = arith.constant 0 : index
    %c0_1 = arith.constant 0 : index
    %0 = vector.load %arg1[%c0, %c0_0, %c0_1] : memref<1x128x136xbf16, #tpu.memory_space<vmem>>, vector<1x128x136xbf16>
    %1 = vector.shape_cast %0 : vector<1x128x136xbf16> to vector<128x136xbf16>
    %c0_2 = arith.constant 0 : index
    %c0_3 = arith.constant 0 : index
    %2 = vector.load %arg3[%c0_2, %c0_3] : memref<136x192xbf16, #tpu.memory_space<vmem>>, vector<136x192xbf16>
    %cst = arith.constant dense<0.000000e+00> : vector<128x192xf32>
    %3 = tpu.matmul %1, %2, %cst {dimension_numbers = #tpu.dot_dimension_numbers<[1], [0], [0], [1], [0, 0, 1, 1], [], []>} : vector<128x136xbf16>, vector<136x192xbf16>, vector<128x192xf32> -> vector<128x192xf32>
    %c0_4 = arith.constant 0 : index
    %c0_5 = arith.constant 0 : index
    %4 = vector.load %arg5[%c0_4, %c0_5] : memref<1x192xf32, #tpu.memory_space<vmem>>, vector<1x192xf32>
    %5 = vector.broadcast %4 : vector<1x192xf32> to vector<128x192xf32>
    %6 = arith.addf %3, %5 : vector<128x192xf32>
    %c0_6 = arith.constant 0 : index
    %c0_7 = arith.constant 0 : index
    %7 = vector.load %arg16[%c0_6, %c0_7] : memref<128x192xf32, #tpu.memory_space<vmem>>, vector<128x192xf32>
    tpu.vector_store %arg16[%c0_6, %c0_7], %6 {strides = array<i32>} : memref<128x192xf32, #tpu.memory_space<vmem>>, vector<128x192xf32>,
    %c0_8 = arith.constant 0 : index
    %c0_9 = arith.constant 0 : index
    %8 = vector.load %arg4[%c0_8, %c0_9] : memref<64x192xbf16, #tpu.memory_space<vmem>>, vector<64x192xbf16>
    %c0_10 = arith.constant 0 : index
    %c0_11 = arith.constant 0 : index
    %9 = vector.load %arg6[%c0_10, %c0_11] : memref<1x64xf32, #tpu.memory_space<vmem>>, vector<1x64xf32>
    %10 = vector.shape_cast %9 : vector<1x64xf32> to vector<1x64xf32>
    %11 = vector.broadcast %10 : vector<1x64xf32> to vector<16x64xf32>
    %cst_12 = arith.constant 0.000000e+00 : f32
    %12 = vector.broadcast %cst_12 : f32 to vector<16x64xf32>
    %c0_i32 = arith.constant 0 : i32
    %c16_i32 = arith.constant 16 : i32
    %13 = arith.muli %c0_i32, %c16_i32 : i32
    %14 = tpu.assume_multiple %13, 16 : i32
    %15 = arith.index_cast %14 : i32 to index
    %c0_13 = arith.constant 0 : index
    %16 = vector.load %arg16[%15, %c0_13] : memref<128x192xf32, #tpu.memory_space<vmem>>, vector<16x192xf32>
    %17 = arith.truncf %12 : vector<16x64xf32> to vector<16x64xbf16>
    %cst_14 = arith.constant dense<0.000000e+00> : vector<16x192xf32>
    %18 = tpu.matmul %17, %8, %cst_14 {dimension_numbers = #tpu.dot_dimension_numbers<[1], [0], [0], [1], [0, 0, 1, 1], [], []>} : vector<16x64xbf16>, vector<64x192xbf16>, vector<16x192xf32> -> vector<16x192xf32>
    %19 = vector.extract_strided_slice %16 {offsets = [0, 0], sizes = [16, 128], strides = [1, 1]} : vector<16x192xf32> to vector<16x128xf32>
    %20 = vector.extract_strided_slice %18 {offsets = [0, 0], sizes = [16, 128], strides = [1, 1]} : vector<16x192xf32> to vector<16x128xf32>
    %21 = arith.addf %19, %20 : vector<16x128xf32>
    %22 = arith.negf %21 : vector<16x128xf32>
    %23 = math.exp %22 : vector<16x128xf32>
    %cst_15 = arith.constant 1.000000e+00 : f32
    %24 = vector.broadcast %cst_15 : f32 to vector<16x128xf32>
    %25 = arith.addf %24, %23 : vector<16x128xf32>
    %26 = arith.divf %24, %25 : vector<16x128xf32>
    %27 = vector.extract_strided_slice %26 {offsets = [0, 0], sizes = [16, 64], strides = [1, 1]} : vector<16x128xf32> to vector<16x64xf32>
    %28 = vector.extract_strided_slice %26 {offsets = [0, 64], sizes = [16, 64], strides = [1, 1]} : vector<16x128xf32> to vector<16x64xf32>
    %29 = vector.extract_strided_slice %16 {offsets = [0, 128], sizes = [16, 64], strides = [1, 1]} : vector<16x192xf32> to vector<16x64xf32>
    %30 = vector.extract_strided_slice %18 {offsets = [0, 128], sizes = [16, 64], strides = [1, 1]} : vector<16x192xf32> to vector<16x64xf32>
    %31 = arith.addf %30, %11 : vector<16x64xf32>
    %32 = arith.mulf %27, %31 : vector<16x64xf32>
    %33 = arith.addf %29, %32 : vector<16x64xf32>
    %34 = math.tanh %33 : vector<16x64xf32>
    %cst_16 = arith.constant 1.000000e+00 : f32
    %35 = vector.broadcast %cst_16 : f32 to vector<16x64xf32>
    %36 = arith.subf %35, %28 : vector<16x64xf32>
    %37 = arith.mulf %36, %34 : vector<16x64xf32>
    %38 = arith.mulf %28, %12 : vector<16x64xf32>
    %39 = arith.addf %37, %38 : vector<16x64xf32>
    %c1_i32 = arith.constant 1 : i32
    %c16_i32_17 = arith.constant 16 : i32
    %40 = arith.muli %c1_i32, %c16_i32_17 : i32
    %41 = tpu.assume_multiple %40, 16 : i32
    %42 = arith.index_cast %41 : i32 to index
    %c0_18 = arith.constant 0 : index
    %43 = vector.load %arg16[%42, %c0_18] : memref<128x192xf32, #tpu.memory_space<vmem>>, vector<16x192xf32>
    %44 = arith.truncf %39 : vector<16x64xf32> to vector<16x64xbf16>
    %cst_19 = arith.constant dense<0.000000e+00> : vector<16x192xf32>
    %45 = tpu.matmul %44, %8, %cst_19 {dimension_numbers = #tpu.dot_dimension_numbers<[1], [0], [0], [1], [0, 0, 1, 1], [], []>} : vector<16x64xbf16>, vector<64x192xbf16>, vector<16x192xf32> -> vector<16x192xf32>
    %46 = vector.extract_strided_slice %43 {offsets = [0, 0], sizes = [16, 128], strides = [1, 1]} : vector<16x192xf32> to vector<16x128xf32>
    %47 = vector.extract_strided_slice %45 {offsets = [0, 0], sizes = [16, 128], strides = [1, 1]} : vector<16x192xf32> to vector<16x128xf32>
    %48 = arith.addf %46, %47 : vector<16x128xf32>
    %49 = arith.negf %48 : vector<16x128xf32>
    %50 = math.exp %49 : vector<16x128xf32>
    %cst_20 = arith.constant 1.000000e+00 : f32
    %51 = vector.broadcast %cst_20 : f32 to vector<16x128xf32>
    %52 = arith.addf %51, %50 : vector<16x128xf32>
    %53 = arith.divf %51, %52 : vector<16x128xf32>
    %54 = vector.extract_strided_slice %53 {offsets = [0, 0], sizes = [16, 64], strides = [1, 1]} : vector<16x128xf32> to vector<16x64xf32>
    %55 = vector.extract_strided_slice %53 {offsets = [0, 64], sizes = [16, 64], strides = [1, 1]} : vector<16x128xf32> to vector<16x64xf32>
    %56 = vector.extract_strided_slice %43 {offsets = [0, 128], sizes = [16, 64], strides = [1, 1]} : vector<16x192xf32> to vector<16x64xf32>
    %57 = vector.extract_strided_slice %45 {offsets = [0, 128], sizes = [16, 64], strides = [1, 1]} : vector<16x192xf32> to vector<16x64xf32>
    %58 = arith.addf %57, %11 : vector<16x64xf32>
    %59 = arith.mulf %54, %58 : vector<16x64xf32>
    %60 = arith.addf %56, %59 : vector<16x64xf32>
    %61 = math.tanh %60 : vector<16x64xf32>
    %cst_21 = arith.constant 1.000000e+00 : f32
    %62 = vector.broadcast %cst_21 : f32 to vector<16x64xf32>
    %63 = arith.subf %62, %55 : vector<16x64xf32>
    %64 = arith.mulf %63, %61 : vector<16x64xf32>
    %65 = arith.mulf %55, %39 : vector<16x64xf32>
    %66 = arith.addf %64, %65 : vector<16x64xf32>
    %c2_i32 = arith.constant 2 : i32
    %c16_i32_22 = arith.constant 16 : i32
    %67 = arith.muli %c2_i32, %c16_i32_22 : i32
    %68 = tpu.assume_multiple %67, 16 : i32
    %69 = arith.index_cast %68 : i32 to index
    %c0_23 = arith.constant 0 : index
    %70 = vector.load %arg16[%69, %c0_23] : memref<128x192xf32, #tpu.memory_space<vmem>>, vector<16x192xf32>
    %71 = arith.truncf %66 : vector<16x64xf32> to vector<16x64xbf16>
    %cst_24 = arith.constant dense<0.000000e+00> : vector<16x192xf32>
    %72 = tpu.matmul %71, %8, %cst_24 {dimension_numbers = #tpu.dot_dimension_numbers<[1], [0], [0], [1], [0, 0, 1, 1], [], []>} : vector<16x64xbf16>, vector<64x192xbf16>, vector<16x192xf32> -> vector<16x192xf32>
    %73 = vector.extract_strided_slice %70 {offsets = [0, 0], sizes = [16, 128], strides = [1, 1]} : vector<16x192xf32> to vector<16x128xf32>
    %74 = vector.extract_strided_slice %72 {offsets = [0, 0], sizes = [16, 128], strides = [1, 1]} : vector<16x192xf32> to vector<16x128xf32>
    %75 = arith.addf %73, %74 : vector<16x128xf32>
    %76 = arith.negf %75 : vector<16x128xf32>
    %77 = math.exp %76 : vector<16x128xf32>
    %cst_25 = arith.constant 1.000000e+00 : f32
    %78 = vector.broadcast %cst_25 : f32 to vector<16x128xf32>
    %79 = arith.addf %78, %77 : vector<16x128xf32>
    %80 = arith.divf %78, %79 : vector<16x128xf32>
    %81 = vector.extract_strided_slice %80 {offsets = [0, 0], sizes = [16, 64], strides = [1, 1]} : vector<16x128xf32> to vector<16x64xf32>
    %82 = vector.extract_strided_slice %80 {offsets = [0, 64], sizes = [16, 64], strides = [1, 1]} : vector<16x128xf32> to vector<16x64xf32>
    %83 = vector.extract_strided_slice %70 {offsets = [0, 128], sizes = [16, 64], strides = [1, 1]} : vector<16x192xf32> to vector<16x64xf32>
    %84 = vector.extract_strided_slice %72 {offsets = [0, 128], sizes = [16, 64], strides = [1, 1]} : vector<16x192xf32> to vector<16x64xf32>
    %85 = arith.addf %84, %11 : vector<16x64xf32>
    %86 = arith.mulf %81, %85 : vector<16x64xf32>
    %87 = arith.addf %83, %86 : vector<16x64xf32>
    %88 = math.tanh %87 : vector<16x64xf32>
    %cst_26 = arith.constant 1.000000e+00 : f32
    %89 = vector.broadcast %cst_26 : f32 to vector<16x64xf32>
    %90 = arith.subf %89, %82 : vector<16x64xf32>
    %91 = arith.mulf %90, %88 : vector<16x64xf32>
    %92 = arith.mulf %82, %66 : vector<16x64xf32>
    %93 = arith.addf %91, %92 : vector<16x64xf32>
    %c3_i32 = arith.constant 3 : i32
    %c16_i32_27 = arith.constant 16 : i32
    %94 = arith.muli %c3_i32, %c16_i32_27 : i32
    %95 = tpu.assume_multiple %94, 16 : i32
    %96 = arith.index_cast %95 : i32 to index
    %c0_28 = arith.constant 0 : index
    %97 = vector.load %arg16[%96, %c0_28] : memref<128x192xf32, #tpu.memory_space<vmem>>, vector<16x192xf32>
    %98 = arith.truncf %93 : vector<16x64xf32> to vector<16x64xbf16>
    %cst_29 = arith.constant dense<0.000000e+00> : vector<16x192xf32>
    %99 = tpu.matmul %98, %8, %cst_29 {dimension_numbers = #tpu.dot_dimension_numbers<[1], [0], [0], [1], [0, 0, 1, 1], [], []>} : vector<16x64xbf16>, vector<64x192xbf16>, vector<16x192xf32> -> vector<16x192xf32>
    %100 = vector.extract_strided_slice %97 {offsets = [0, 0], sizes = [16, 128], strides = [1, 1]} : vector<16x192xf32> to vector<16x128xf32>
    %101 = vector.extract_strided_slice %99 {offsets = [0, 0], sizes = [16, 128], strides = [1, 1]} : vector<16x192xf32> to vector<16x128xf32>
    %102 = arith.addf %100, %101 : vector<16x128xf32>
    %103 = arith.negf %102 : vector<16x128xf32>
    %104 = math.exp %103 : vector<16x128xf32>
    %cst_30 = arith.constant 1.000000e+00 : f32
    %105 = vector.broadcast %cst_30 : f32 to vector<16x128xf32>
    %106 = arith.addf %105, %104 : vector<16x128xf32>
    %107 = arith.divf %105, %106 : vector<16x128xf32>
    %108 = vector.extract_strided_slice %107 {offsets = [0, 0], sizes = [16, 64], strides = [1, 1]} : vector<16x128xf32> to vector<16x64xf32>
    %109 = vector.extract_strided_slice %107 {offsets = [0, 64], sizes = [16, 64], strides = [1, 1]} : vector<16x128xf32> to vector<16x64xf32>
    %110 = vector.extract_strided_slice %97 {offsets = [0, 128], sizes = [16, 64], strides = [1, 1]} : vector<16x192xf32> to vector<16x64xf32>
    %111 = vector.extract_strided_slice %99 {offsets = [0, 128], sizes = [16, 64], strides = [1, 1]} : vector<16x192xf32> to vector<16x64xf32>
    %112 = arith.addf %111, %11 : vector<16x64xf32>
    %113 = arith.mulf %108, %112 : vector<16x64xf32>
    %114 = arith.addf %110, %113 : vector<16x64xf32>
    %115 = math.tanh %114 : vector<16x64xf32>
    %cst_31 = arith.constant 1.000000e+00 : f32
    %116 = vector.broadcast %cst_31 : f32 to vector<16x64xf32>
    %117 = arith.subf %116, %109 : vector<16x64xf32>
    %118 = arith.mulf %117, %115 : vector<16x64xf32>
    %119 = arith.mulf %109, %93 : vector<16x64xf32>
    %120 = arith.addf %118, %119 : vector<16x64xf32>
    %c4_i32 = arith.constant 4 : i32
    %c16_i32_32 = arith.constant 16 : i32
    %121 = arith.muli %c4_i32, %c16_i32_32 : i32
    %122 = tpu.assume_multiple %121, 16 : i32
    %123 = arith.index_cast %122 : i32 to index
    %c0_33 = arith.constant 0 : index
    %124 = vector.load %arg16[%123, %c0_33] : memref<128x192xf32, #tpu.memory_space<vmem>>, vector<16x192xf32>
    %125 = arith.truncf %120 : vector<16x64xf32> to vector<16x64xbf16>
    %cst_34 = arith.constant dense<0.000000e+00> : vector<16x192xf32>
    %126 = tpu.matmul %125, %8, %cst_34 {dimension_numbers = #tpu.dot_dimension_numbers<[1], [0], [0], [1], [0, 0, 1, 1], [], []>} : vector<16x64xbf16>, vector<64x192xbf16>, vector<16x192xf32> -> vector<16x192xf32>
    %127 = vector.extract_strided_slice %124 {offsets = [0, 0], sizes = [16, 128], strides = [1, 1]} : vector<16x192xf32> to vector<16x128xf32>
    %128 = vector.extract_strided_slice %126 {offsets = [0, 0], sizes = [16, 128], strides = [1, 1]} : vector<16x192xf32> to vector<16x128xf32>
    %129 = arith.addf %127, %128 : vector<16x128xf32>
    %130 = arith.negf %129 : vector<16x128xf32>
    %131 = math.exp %130 : vector<16x128xf32>
    %cst_35 = arith.constant 1.000000e+00 : f32
    %132 = vector.broadcast %cst_35 : f32 to vector<16x128xf32>
    %133 = arith.addf %132, %131 : vector<16x128xf32>
    %134 = arith.divf %132, %133 : vector<16x128xf32>
    %135 = vector.extract_strided_slice %134 {offsets = [0, 0], sizes = [16, 64], strides = [1, 1]} : vector<16x128xf32> to vector<16x64xf32>
    %136 = vector.extract_strided_slice %134 {offsets = [0, 64], sizes = [16, 64], strides = [1, 1]} : vector<16x128xf32> to vector<16x64xf32>
    %137 = vector.extract_strided_slice %124 {offsets = [0, 128], sizes = [16, 64], strides = [1, 1]} : vector<16x192xf32> to vector<16x64xf32>
    %138 = vector.extract_strided_slice %126 {offsets = [0, 128], sizes = [16, 64], strides = [1, 1]} : vector<16x192xf32> to vector<16x64xf32>
    %139 = arith.addf %138, %11 : vector<16x64xf32>
    %140 = arith.mulf %135, %139 : vector<16x64xf32>
    %141 = arith.addf %137, %140 : vector<16x64xf32>
    %142 = math.tanh %141 : vector<16x64xf32>
    %cst_36 = arith.constant 1.000000e+00 : f32
    %143 = vector.broadcast %cst_36 : f32 to vector<16x64xf32>
    %144 = arith.subf %143, %136 : vector<16x64xf32>
    %145 = arith.mulf %144, %142 : vector<16x64xf32>
    %146 = arith.mulf %136, %120 : vector<16x64xf32>
    %147 = arith.addf %145, %146 : vector<16x64xf32>
    %c5_i32 = arith.constant 5 : i32
    %c16_i32_37 = arith.constant 16 : i32
    %148 = arith.muli %c5_i32, %c16_i32_37 : i32
    %149 = tpu.assume_multiple %148, 16 : i32
    %150 = arith.index_cast %149 : i32 to index
    %c0_38 = arith.constant 0 : index
    %151 = vector.load %arg16[%150, %c0_38] : memref<128x192xf32, #tpu.memory_space<vmem>>, vector<16x192xf32>
    %152 = arith.truncf %147 : vector<16x64xf32> to vector<16x64xbf16>
    %cst_39 = arith.constant dense<0.000000e+00> : vector<16x192xf32>
    %153 = tpu.matmul %152, %8, %cst_39 {dimension_numbers = #tpu.dot_dimension_numbers<[1], [0], [0], [1], [0, 0, 1, 1], [], []>} : vector<16x64xbf16>, vector<64x192xbf16>, vector<16x192xf32> -> vector<16x192xf32>
    %154 = vector.extract_strided_slice %151 {offsets = [0, 0], sizes = [16, 128], strides = [1, 1]} : vector<16x192xf32> to vector<16x128xf32>
    %155 = vector.extract_strided_slice %153 {offsets = [0, 0], sizes = [16, 128], strides = [1, 1]} : vector<16x192xf32> to vector<16x128xf32>
    %156 = arith.addf %154, %155 : vector<16x128xf32>
    %157 = arith.negf %156 : vector<16x128xf32>
    %158 = math.exp %157 : vector<16x128xf32>
    %cst_40 = arith.constant 1.000000e+00 : f32
    %159 = vector.broadcast %cst_40 : f32 to vector<16x128xf32>
    %160 = arith.addf %159, %158 : vector<16x128xf32>
    %161 = arith.divf %159, %160 : vector<16x128xf32>
    %162 = vector.extract_strided_slice %161 {offsets = [0, 0], sizes = [16, 64], strides = [1, 1]} : vector<16x128xf32> to vector<16x64xf32>
    %163 = vector.extract_strided_slice %161 {offsets = [0, 64], sizes = [16, 64], strides = [1, 1]} : vector<16x128xf32> to vector<16x64xf32>
    %164 = vector.extract_strided_slice %151 {offsets = [0, 128], sizes = [16, 64], strides = [1, 1]} : vector<16x192xf32> to vector<16x64xf32>
    %165 = vector.extract_strided_slice %153 {offsets = [0, 128], sizes = [16, 64], strides = [1, 1]} : vector<16x192xf32> to vector<16x64xf32>
    %166 = arith.addf %165, %11 : vector<16x64xf32>
    %167 = arith.mulf %162, %166 : vector<16x64xf32>
    %168 = arith.addf %164, %167 : vector<16x64xf32>
    %169 = math.tanh %168 : vector<16x64xf32>
    %cst_41 = arith.constant 1.000000e+00 : f32
    %170 = vector.broadcast %cst_41 : f32 to vector<16x64xf32>
    %171 = arith.subf %170, %163 : vector<16x64xf32>
    %172 = arith.mulf %171, %169 : vector<16x64xf32>
    %173 = arith.mulf %163, %147 : vector<16x64xf32>
    %174 = arith.addf %172, %173 : vector<16x64xf32>
    %c6_i32 = arith.constant 6 : i32
    %c16_i32_42 = arith.constant 16 : i32
    %175 = arith.muli %c6_i32, %c16_i32_42 : i32
    %176 = tpu.assume_multiple %175, 16 : i32
    %177 = arith.index_cast %176 : i32 to index
    %c0_43 = arith.constant 0 : index
    %178 = vector.load %arg16[%177, %c0_43] : memref<128x192xf32, #tpu.memory_space<vmem>>, vector<16x192xf32>
    %179 = arith.truncf %174 : vector<16x64xf32> to vector<16x64xbf16>
    %cst_44 = arith.constant dense<0.000000e+00> : vector<16x192xf32>
    %180 = tpu.matmul %179, %8, %cst_44 {dimension_numbers = #tpu.dot_dimension_numbers<[1], [0], [0], [1], [0, 0, 1, 1], [], []>} : vector<16x64xbf16>, vector<64x192xbf16>, vector<16x192xf32> -> vector<16x192xf32>
    %181 = vector.extract_strided_slice %178 {offsets = [0, 0], sizes = [16, 128], strides = [1, 1]} : vector<16x192xf32> to vector<16x128xf32>
    %182 = vector.extract_strided_slice %180 {offsets = [0, 0], sizes = [16, 128], strides = [1, 1]} : vector<16x192xf32> to vector<16x128xf32>
    %183 = arith.addf %181, %182 : vector<16x128xf32>
    %184 = arith.negf %183 : vector<16x128xf32>
    %185 = math.exp %184 : vector<16x128xf32>
    %cst_45 = arith.constant 1.000000e+00 : f32
    %186 = vector.broadcast %cst_45 : f32 to vector<16x128xf32>
    %187 = arith.addf %186, %185 : vector<16x128xf32>
    %188 = arith.divf %186, %187 : vector<16x128xf32>
    %189 = vector.extract_strided_slice %188 {offsets = [0, 0], sizes = [16, 64], strides = [1, 1]} : vector<16x128xf32> to vector<16x64xf32>
    %190 = vector.extract_strided_slice %188 {offsets = [0, 64], sizes = [16, 64], strides = [1, 1]} : vector<16x128xf32> to vector<16x64xf32>
    %191 = vector.extract_strided_slice %178 {offsets = [0, 128], sizes = [16, 64], strides = [1, 1]} : vector<16x192xf32> to vector<16x64xf32>
    %192 = vector.extract_strided_slice %180 {offsets = [0, 128], sizes = [16, 64], strides = [1, 1]} : vector<16x192xf32> to vector<16x64xf32>
    %193 = arith.addf %192, %11 : vector<16x64xf32>
    %194 = arith.mulf %189, %193 : vector<16x64xf32>
    %195 = arith.addf %191, %194 : vector<16x64xf32>
    %196 = math.tanh %195 : vector<16x64xf32>
    %cst_46 = arith.constant 1.000000e+00 : f32
    %197 = vector.broadcast %cst_46 : f32 to vector<16x64xf32>
    %198 = arith.subf %197, %190 : vector<16x64xf32>
    %199 = arith.mulf %198, %196 : vector<16x64xf32>
    %200 = arith.mulf %190, %174 : vector<16x64xf32>
    %201 = arith.addf %199, %200 : vector<16x64xf32>
    %c7_i32 = arith.constant 7 : i32
    %c16_i32_47 = arith.constant 16 : i32
    %202 = arith.muli %c7_i32, %c16_i32_47 : i32
    %203 = tpu.assume_multiple %202, 16 : i32
    %204 = arith.index_cast %203 : i32 to index
    %c0_48 = arith.constant 0 : index
    %205 = vector.load %arg16[%204, %c0_48] : memref<128x192xf32, #tpu.memory_space<vmem>>, vector<16x192xf32>
    %206 = arith.truncf %201 : vector<16x64xf32> to vector<16x64xbf16>
    %cst_49 = arith.constant dense<0.000000e+00> : vector<16x192xf32>
    %207 = tpu.matmul %206, %8, %cst_49 {dimension_numbers = #tpu.dot_dimension_numbers<[1], [0], [0], [1], [0, 0, 1, 1], [], []>} : vector<16x64xbf16>, vector<64x192xbf16>, vector<16x192xf32> -> vector<16x192xf32>
    %208 = vector.extract_strided_slice %205 {offsets = [0, 0], sizes = [16, 128], strides = [1, 1]} : vector<16x192xf32> to vector<16x128xf32>
    %209 = vector.extract_strided_slice %207 {offsets = [0, 0], sizes = [16, 128], strides = [1, 1]} : vector<16x192xf32> to vector<16x128xf32>
    %210 = arith.addf %208, %209 : vector<16x128xf32>
    %211 = arith.negf %210 : vector<16x128xf32>
    %212 = math.exp %211 : vector<16x128xf32>
    %cst_50 = arith.constant 1.000000e+00 : f32
    %213 = vector.broadcast %cst_50 : f32 to vector<16x128xf32>
    %214 = arith.addf %213, %212 : vector<16x128xf32>
    %215 = arith.divf %213, %214 : vector<16x128xf32>
    %216 = vector.extract_strided_slice %215 {offsets = [0, 0], sizes = [16, 64], strides = [1, 1]} : vector<16x128xf32> to vector<16x64xf32>
    %217 = vector.extract_strided_slice %215 {offsets = [0, 64], sizes = [16, 64], strides = [1, 1]} : vector<16x128xf32> to vector<16x64xf32>
    %218 = vector.extract_strided_slice %205 {offsets = [0, 128], sizes = [16, 64], strides = [1, 1]} : vector<16x192xf32> to vector<16x64xf32>
    %219 = vector.extract_strided_slice %207 {offsets = [0, 128], sizes = [16, 64], strides = [1, 1]} : vector<16x192xf32> to vector<16x64xf32>
    %220 = arith.addf %219, %11 : vector<16x64xf32>
    %221 = arith.mulf %216, %220 : vector<16x64xf32>
    %222 = arith.addf %218, %221 : vector<16x64xf32>
    %223 = math.tanh %222 : vector<16x64xf32>
    %cst_51 = arith.constant 1.000000e+00 : f32
    %224 = vector.broadcast %cst_51 : f32 to vector<16x64xf32>
    %225 = arith.subf %224, %217 : vector<16x64xf32>
    %226 = arith.mulf %225, %223 : vector<16x64xf32>
    %227 = arith.mulf %217, %201 : vector<16x64xf32>
    %228 = arith.addf %226, %227 : vector<16x64xf32>
    %c8_i32 = arith.constant 8 : i32
    %c0_52 = arith.constant 0 : index
    %c0_53 = arith.constant 0 : index
    %c0_54 = arith.constant 0 : index
    %229 = vector.load %arg2[%c0_52, %c0_53, %c0_54] : memref<1x16x136xbf16, #tpu.memory_space<vmem>>, vector<1x16x136xbf16>
    %230 = vector.shape_cast %229 : vector<1x16x136xbf16> to vector<16x136xbf16>
    %c0_55 = arith.constant 0 : index
    %c0_56 = arith.constant 0 : index
    %231 = vector.load %arg7[%c0_55, %c0_56] : memref<136x192xbf16, #tpu.memory_space<vmem>>, vector<136x192xbf16>
    %cst_57 = arith.constant dense<0.000000e+00> : vector<16x192xf32>
    %232 = tpu.matmul %230, %231, %cst_57 {dimension_numbers = #tpu.dot_dimension_numbers<[1], [0], [0], [1], [0, 0, 1, 1], [], []>} : vector<16x136xbf16>, vector<136x192xbf16>, vector<16x192xf32> -> vector<16x192xf32>
    %c0_58 = arith.constant 0 : index
    %c0_59 = arith.constant 0 : index
    %233 = vector.load %arg8[%c0_58, %c0_59] : memref<1x192xf32, #tpu.memory_space<vmem>>, vector<1x192xf32>
    %234 = vector.broadcast %233 : vector<1x192xf32> to vector<16x192xf32>
    %235 = arith.addf %232, %234 : vector<16x192xf32>
    %236 = vector.extract_strided_slice %235 {offsets = [0, 0], sizes = [16, 128], strides = [1, 1]} : vector<16x192xf32> to vector<16x128xf32>
    %237 = arith.negf %236 : vector<16x128xf32>
    %238 = math.exp %237 : vector<16x128xf32>
    %cst_60 = arith.constant 1.000000e+00 : f32
    %239 = vector.broadcast %cst_60 : f32 to vector<16x128xf32>
    %240 = arith.addf %239, %238 : vector<16x128xf32>
    %241 = arith.divf %239, %240 : vector<16x128xf32>
    %242 = vector.extract_strided_slice %241 {offsets = [0, 0], sizes = [16, 64], strides = [1, 1]} : vector<16x128xf32> to vector<16x64xf32>
    %243 = vector.extract_strided_slice %241 {offsets = [0, 64], sizes = [16, 64], strides = [1, 1]} : vector<16x128xf32> to vector<16x64xf32>
    %244 = vector.extract_strided_slice %235 {offsets = [0, 128], sizes = [16, 64], strides = [1, 1]} : vector<16x192xf32> to vector<16x64xf32>
    %c0_61 = arith.constant 0 : index
    %c0_62 = arith.constant 0 : index
    %245 = vector.load %arg9[%c0_61, %c0_62] : memref<1x64xf32, #tpu.memory_space<vmem>>, vector<1x64xf32>
    %246 = vector.shape_cast %245 : vector<1x64xf32> to vector<1x64xf32>
    %247 = vector.broadcast %246 : vector<1x64xf32> to vector<16x64xf32>
    %248 = arith.mulf %242, %247 : vector<16x64xf32>
    %249 = arith.addf %244, %248 : vector<16x64xf32>
    %250 = math.tanh %249 : vector<16x64xf32>
    %cst_63 = arith.constant 1.000000e+00 : f32
    %251 = vector.broadcast %cst_63 : f32 to vector<16x64xf32>
    %252 = arith.subf %251, %243 : vector<16x64xf32>
    %253 = arith.mulf %252, %250 : vector<16x64xf32>
    %254 = arith.truncf %228 : vector<16x64xf32> to vector<16x64xbf16>
    %c0_64 = arith.constant 0 : index
    %c0_65 = arith.constant 0 : index
    %255 = vector.load %arg10[%c0_64, %c0_65] : memref<64x64xbf16, #tpu.memory_space<vmem>>, vector<64x64xbf16>
    %cst_66 = arith.constant dense<0.000000e+00> : vector<16x64xf32>
    %256 = tpu.matmul %254, %255, %cst_66 {dimension_numbers = #tpu.dot_dimension_numbers<[1], [0], [0], [1], [0, 0, 1, 1], [], []>} : vector<16x64xbf16>, vector<64x64xbf16>, vector<16x64xf32> -> vector<16x64xf32>
    %257 = arith.truncf %253 : vector<16x64xf32> to vector<16x64xbf16>
    %c0_67 = arith.constant 0 : index
    %c0_68 = arith.constant 0 : index
    %258 = vector.load %arg11[%c0_67, %c0_68] : memref<64x64xbf16, #tpu.memory_space<vmem>>, vector<64x64xbf16>
    %cst_69 = arith.constant dense<0.000000e+00> : vector<16x64xf32>
    %259 = tpu.matmul %257, %258, %cst_69 {dimension_numbers = #tpu.dot_dimension_numbers<[1], [0], [0], [1], [0, 0, 1, 1], [], []>} : vector<16x64xbf16>, vector<64x64xbf16>, vector<16x64xf32> -> vector<16x64xf32>
    %260 = arith.addf %256, %259 : vector<16x64xf32>
    %c0_70 = arith.constant 0 : index
    %c0_71 = arith.constant 0 : index
    %261 = vector.load %arg12[%c0_70, %c0_71] : memref<1x64xf32, #tpu.memory_space<vmem>>, vector<1x64xf32>
    %262 = vector.broadcast %261 : vector<1x64xf32> to vector<16x64xf32>
    %263 = arith.addf %260, %262 : vector<16x64xf32>
    %cst_72 = arith.constant 0.000000e+00 : f32
    %264 = vector.broadcast %cst_72 : f32 to vector<16x64xf32>
    %265 = arith.maximumf %263, %264 : vector<16x64xf32>
    %266 = arith.truncf %265 : vector<16x64xf32> to vector<16x64xbf16>
    %c0_73 = arith.constant 0 : index
    %c0_74 = arith.constant 0 : index
    %267 = vector.load %arg13[%c0_73, %c0_74] : memref<64x2xbf16, #tpu.memory_space<vmem>>, vector<64x2xbf16>
    %cst_75 = arith.constant dense<0.000000e+00> : vector<16x2xf32>
    %268 = tpu.matmul %266, %267, %cst_75 {dimension_numbers = #tpu.dot_dimension_numbers<[1], [0], [0], [1], [0, 0, 1, 1], [], []>} : vector<16x64xbf16>, vector<64x2xbf16>, vector<16x2xf32> -> vector<16x2xf32>
    %c0_76 = arith.constant 0 : index
    %c0_77 = arith.constant 0 : index
    %269 = vector.load %arg14[%c0_76, %c0_77] : memref<1x2xf32, #tpu.memory_space<vmem>>, vector<1x2xf32>
    %270 = vector.broadcast %269 : vector<1x2xf32> to vector<16x2xf32>
    %271 = arith.addf %268, %270 : vector<16x2xf32>
    %cst_78 = arith.constant dense<0xFF800000> : vector<16xf32>
    %272 = vector.multi_reduction <maximumf>, %271, %cst_78 [1] : vector<16x2xf32> to vector<16xf32>
    %273 = vector.shape_cast %272 : vector<16xf32> to vector<16x1xf32>
    %274 = vector.broadcast %273 : vector<16x1xf32> to vector<16x2xf32>
    %275 = arith.subf %271, %274 : vector<16x2xf32>
    %276 = math.exp %275 : vector<16x2xf32>
    %cst_79 = arith.constant dense<0.000000e+00> : vector<16xf32>
    %277 = vector.multi_reduction <add>, %276, %cst_79 [1] : vector<16x2xf32> to vector<16xf32>
    %278 = vector.shape_cast %277 : vector<16xf32> to vector<16x1xf32>
    %279 = tpu.reciprocal %278 {approx = true} : vector<16x1xf32> -> vector<16x1xf32>
    %280 = vector.broadcast %279 : vector<16x1xf32> to vector<16x2xf32>
    %281 = arith.mulf %276, %280 : vector<16x2xf32>
    %c0_80 = arith.constant 0 : index
    %c0_81 = arith.constant 0 : index
    %282 = vector.load %arg15[%c0_80, %c0_81] : memref<16x2xf32, #tpu.memory_space<vmem>>, vector<16x2xf32>
    tpu.vector_store %arg15[%c0_80, %c0_81], %281 {strides = array<i32>} : memref<16x2xf32, #tpu.memory_space<vmem>>, vector<16x2xf32>,
    return
  }
  func.func @transform_0(%arg0: i32) -> (i32, i32, i32) {
    %c0_i32 = arith.constant 0 : i32
    %c0_i32_0 = arith.constant 0 : i32
    %c0_i32_1 = arith.constant 0 : i32
    return %arg0, %c0_i32, %c0_i32_0 : i32, i32, i32
  }
  func.func @transform_1(%arg0: i32) -> (i32, i32, i32) {
    %c0_i32 = arith.constant 0 : i32
    %c0_i32_0 = arith.constant 0 : i32
    %c0_i32_1 = arith.constant 0 : i32
    return %arg0, %c0_i32, %c0_i32_0 : i32, i32, i32
  }
  func.func @transform_2(%arg0: i32) -> (i32, i32) {
    %c0_i32 = arith.constant 0 : i32
    %c0_i32_0 = arith.constant 0 : i32
    %c0_i32_1 = arith.constant 0 : i32
    return %c0_i32, %c0_i32_0 : i32, i32
  }
  func.func @transform_3(%arg0: i32) -> (i32, i32) {
    %c0_i32 = arith.constant 0 : i32
    %c0_i32_0 = arith.constant 0 : i32
    %c0_i32_1 = arith.constant 0 : i32
    return %c0_i32, %c0_i32_0 : i32, i32
  }
  func.func @transform_4(%arg0: i32) -> (i32, i32) {
    %c0_i32 = arith.constant 0 : i32
    %c0_i32_0 = arith.constant 0 : i32
    %c0_i32_1 = arith.constant 0 : i32
    return %c0_i32, %c0_i32_0 : i32, i32
  }
  func.func @transform_5(%arg0: i32) -> (i32, i32) {
    %c0_i32 = arith.constant 0 : i32
    %c0_i32_0 = arith.constant 0 : i32
    %c0_i32_1 = arith.constant 0 : i32
    return %c0_i32, %c0_i32_0 : i32, i32
  }
  func.func @transform_6(%arg0: i32) -> (i32, i32) {
    %c0_i32 = arith.constant 0 : i32
    %c0_i32_0 = arith.constant 0 : i32
    %c0_i32_1 = arith.constant 0 : i32
    return %c0_i32, %c0_i32_0 : i32, i32
  }
  func.func @transform_7(%arg0: i32) -> (i32, i32) {
    %c0_i32 = arith.constant 0 : i32
    %c0_i32_0 = arith.constant 0 : i32
    %c0_i32_1 = arith.constant 0 : i32
    return %c0_i32, %c0_i32_0 : i32, i32
  }
  func.func @transform_8(%arg0: i32) -> (i32, i32) {
    %c0_i32 = arith.constant 0 : i32
    %c0_i32_0 = arith.constant 0 : i32
    %c0_i32_1 = arith.constant 0 : i32
    return %c0_i32, %c0_i32_0 : i32, i32
  }
  func.func @transform_9(%arg0: i32) -> (i32, i32) {
    %c0_i32 = arith.constant 0 : i32
    %c0_i32_0 = arith.constant 0 : i32
    %c0_i32_1 = arith.constant 0 : i32
    return %c0_i32, %c0_i32_0 : i32, i32
  }
  func.func @transform_10(%arg0: i32) -> (i32, i32) {
    %c0_i32 = arith.constant 0 : i32
    %c0_i32_0 = arith.constant 0 : i32
    %c0_i32_1 = arith.constant 0 : i32
    return %c0_i32, %c0_i32_0 : i32, i32
  }
  func.func @transform_11(%arg0: i32) -> (i32, i32) {
    %c0_i32 = arith.constant 0 : i32
    %c0_i32_0 = arith.constant 0 : i32
    %c0_i32_1 = arith.constant 0 : i32
    return %c0_i32, %c0_i32_0 : i32, i32
  }
  func.func @transform_12(%arg0: i32) -> (i32, i32) {
    %c0_i32 = arith.constant 0 : i32
    %c0_i32_0 = arith.constant 0 : i32
    %c0_i32_1 = arith.constant 0 : i32
    return %c0_i32, %c0_i32_0 : i32, i32
  }
  func.func @transform_13(%arg0: i32) -> (i32, i32) {
    %c0_i32 = arith.constant 0 : i32
    %c0_i32_0 = arith.constant 0 : i32
    %c0_i32_1 = arith.constant 0 : i32
    return %c0_i32, %c0_i32_0 : i32, i32
  }
  func.func @transform_14(%arg0: i32) -> (i32, i32) {
    %c0_i32 = arith.constant 0 : i32
    %c0_i32_0 = arith.constant 0 : i32
    return %arg0, %c0_i32 : i32, i32
  }
}

</mosaic_0001>

<bundles_post_ra>
// kernel: tpu_custom_call.1
= control target key start
LH: loop header
LB: loop body
LE: loop exit
PB: predicated region body
PF: predicated region fallthrough
CT: control target
= control target key end

     0   :  { %19 = vsyncpa [#allocation4], 0  ;;  %s2872_s0 = inlined_call_operand.vmem [shape: bf16[1,128,136], index: 0, kind: input, shape index: {}]   ;;  %s2873_s1 = inlined_call_operand.hbm [shape: bf16[1,16,136], index: 1, kind: input, shape index: {}]   ;;  %s2874_s2 = inlined_call_operand.vmem [shape: bf16[136,192], index: 2, kind: input, shape index: {}]   ;;  %s2875_s3 = inlined_call_operand.vmem [shape: bf16[64,192], index: 3, kind: input, shape index: {}]   ;;  %s2876_s4 = inlined_call_operand.vmem [shape: f32[1,192], index: 4, kind: input, shape index: {}]   ;;  %s2877_s5 = inlined_call_operand.hbm [shape: f32[1,64], index: 5, kind: input, shape index: {}]   ;;  %s2878_s6 = inlined_call_operand.hbm [shape: bf16[136,192], index: 6, kind: input, shape index: {}]   ;;  %s2879_s7 = inlined_call_operand.vmem [shape: f32[1,192], index: 7, kind: input, shape index: {}]   ;;  %s2880_s8 = inlined_call_operand.vmem [shape: f32[1,64], index: 8, kind: input, shape index: {}]   ;;  %s2881_s9 = inlined_call_operand.vmem [shape: bf16[64,64], index: 9, kind: input, shape index: {}]   ;;  %s2882_s10 = inlined_call_operand.hbm [shape: bf16[64,64], index: 10, kind: input, shape index: {}]   ;;  %s2883_s11 = inlined_call_operand.vmem [shape: f32[1,64], index: 11, kind: input, shape index: {}]   ;;  %s2884_s12 = inlined_call_operand.vmem [shape: bf16[64,2], index: 12, kind: input, shape index: {}]   ;;  %s2885_s13 = inlined_call_operand.vmem [shape: f32[1,2], index: 13, kind: input, shape index: {}]   ;;  %s2886_s14 = inlined_call_operand.vmem [shape: f32[16,2], index: 14, kind: output, shape index: {}]  }
   0x1   :  { %20 = vsyncpa [#allocation6], 0 }
   0x2   :  { %21 = vsyncpa [#allocation9], 0  ;;  %s2285_s29 = smov [#allocation5]   ;;  %s2286_s15 = smov [#allocation3]  }
   0x3   :  { %s48_s30 = sshll.u32 %s2285_s29, 4  ;;  %s29_s16 = sshll.u32 %s2286_s15, 4  ;;  %s49_s30 = int_to_ptr.vmem [resolvable:$true] %s48_s30  ;;  %s30_s16 = int_to_ptr.vmem [resolvable:$true] %s29_s16 }
   0x4   :  { %s2207_s17 = scalar_lea.vmem %s49_s30, 16  ;;  %s2211_s18 = scalar_lea.vmem %s49_s30, 32 }
   0x5   :  { %p2208_p0 = scmp.ne.s32.totalorder %s49_s30, %s2207_s17  ;;  %p2212_p1 = scmp.lt.s32.totalorder %s49_s30, %s49_s30 }
   0x6   :  { %p2213_p2 = scmp.lt.s32.totalorder %s2211_s18, %s2207_s17 }
   0x8   :  { %p2214_p3 = por %p2213_p2, %p2212_p1 }
   0xa   :  { %p2215_p4 = pnand %p2214_p3, %p2208_p0 }
   0xc   :  { %2218 = shalt.err (!%p2215_p4)
}
   0xd   :  { %51 = dma.hbm_to_vmem [thread:$0]  %s2877_s5, 16, %s49_s30, [#allocation6]  }
   0xe   :  { %s2227_s21 = scalar_lea.vmem %s30_s16, 256  ;;  %p2232_p6 = scmp.lt.s32.totalorder %s30_s16, %s30_s16 }
   0xf   :  { %p2228_p5 = scmp.ne.s32.totalorder %s30_s16, %s2227_s21  ;;  %p2233_p7 = scmp.lt.s32.totalorder %s2227_s21, %s2227_s21 }
  0x11   :  { %p2234_p8 = por %p2233_p7, %p2232_p6 }
  0x13   :  { %p2235_p9 = pnand %p2234_p8, %p2228_p5 }
  0x15   :  { %2238 = shalt.err (!%p2235_p9)
}
  0x16   :  { %s2287_s22 = smov 128   ;;  %s2288_s23 = smov 8  }
  0x17   :  { %35 = dma.hbm_to_vmem [thread:$0]  %s2873_s1, 256, %s30_s16, [#allocation4], %s2287_s22, %s2287_s22, %s2288_s23  }
  0x18   :  { %s2289_s26 = smov [#allocation7]   ;;  %s2290_s28 = smov [#allocation8]  }
  0x19   :  { %s57_s27 = sshll.u32 %s2289_s26, 4  ;;  %s75_s29 = sshll.u32 %s2290_s28, 4  ;;  %s58_s27 = int_to_ptr.vmem [resolvable:$true] %s57_s27  ;;  %s76_s29 = int_to_ptr.vmem [resolvable:$true] %s75_s29 }
  0x1a   :  { %s2247_s5 = scalar_lea.vmem %s58_s27, 2176  ;;  %p2252_p11 = scmp.lt.s32.totalorder %s58_s27, %s58_s27 }
  0x1b   :  { %p2248_p10 = scmp.ne.s32.totalorder %s58_s27, %s2247_s5  ;;  %p2253_p12 = scmp.lt.s32.totalorder %s2247_s5, %s2247_s5 }
  0x1d   :  { %p2254_p13 = por %p2253_p12, %p2252_p11 }
  0x1f   :  { %p2255_p0 = pnand %p2254_p13, %p2248_p10 }
  0x21   :  { %2258 = shalt.err (!%p2255_p0)
}
  0x22   :  { %63 = dma.hbm_to_vmem [thread:$0]  %s2878_s6, 2176, %s58_s27, [#allocation6], %s2287_s22, %s2287_s22, %s2288_s23  }
  0x23   :  { %s2267_s17 = scalar_lea.vmem %s76_s29, 512  ;;  %p2272_p2 = scmp.lt.s32.totalorder %s76_s29, %s76_s29 }
  0x24   :  { %p2268_p1 = scmp.ne.s32.totalorder %s76_s29, %s2267_s17  ;;  %p2273_p3 = scmp.lt.s32.totalorder %s2267_s17, %s2267_s17 }
  0x26   :  { %p2274_p4 = por %p2273_p3, %p2272_p2 }
  0x28   :  { %p2275_p5 = pnand %p2274_p4, %p2268_p1 }
  0x2a   :  { %2278 = shalt.err (!%p2275_p5)
}
  0x2b   :  { %s2291_s1 = smov 64   ;;  %s2292_s16 = smov 4  }
  0x2c   :  { %81 = dma.hbm_to_vmem [thread:$0]  %s2882_s10, 512, %s76_s29, [#allocation9], %s2291_s1, %s2291_s1, %s2292_s16  }
  0x2d   :  { %2279 = dma.done.wait [#allocation4], 256  }
  0x2e   :  { %2280 = vsyncadd [#allocation4], 4294967040 }
  0x2f   :  { %2281 = dma.done.wait [#allocation6], 2192  }
  0x30   :  { %2282 = vsyncadd [#allocation6], 4294965104 }
  0x31   :  { %2283 = dma.done.wait [#allocation9], 512  }
  0x32   :  { %2284 = vsyncadd [#allocation9], 4294966784  ;;  %v2293_v0 = vmov 0   ;;  %v1979_v1 = vld [vmem:[%s2874_s2 + $0x74] ss:$8 sps:$4 sm:$0xff]   ;;  %vm303_vm0 = vcmask 64512   ;;  %v136_v31 = vlaneseq }
  0x33   :  { %578 = vmatprep.mubr.bf16.mxu1 %v2293_v0  ;;  %v1981_v2 = vld [vmem:[%s2874_s2 + $0x70] ss:$8 sps:$4 sm:$0xff]   ;;  %335 = vmatprep.subr.bf16.mxu0 %v1979_v1  ;;  %v1982_v3 = vld [vmem:[%s2874_s2 + $0x64] ss:$8 sps:$4 sm:$0xff]   ;;  %v1984_v4 = vld [vmem:[%s2874_s2 + $0x60] ss:$8 sps:$4 sm:$0xff]  }
  0x34   :  { %336 = vmatpush1.bf16.msra.mxu0 %v1981_v2  ;;  %v1985_v5 = vld [vmem:[%s2874_s2 + $0x54] ss:$8 sps:$4 sm:$0xff]   ;;  %v1987_v6 = vld [vmem:[%s2874_s2 + $0x50] ss:$8 sps:$4 sm:$0xff]   ;;  %v1988_v7 = vld [vmem:[%s2874_s2 + $0x44] ss:$8 sps:$4 sm:$0xff]  }
  0x35   :  { %337 = vmatprep.subr.bf16.mxu0 %v1982_v3  ;;  %v2410_v8 = vld [vmem:[%s2875_s3 + $0x34] ss:$8 sps:$4 sm:$0xff]   ;;  %v2415_v9 = vld [vmem:[%s2875_s3 + $0x30] ss:$8 sps:$4 sm:$0xff]   ;;  %v1990_v10 = vld [vmem:[%s2874_s2 + $0x40] ss:$8 sps:$4 sm:$0xff]  }
  0x36   :  { %554 = vmatprep.subr.bf16.mxu1 %v2410_v8  ;;  %v1991_v11 = vld [vmem:[%s2874_s2 + $0x34] ss:$8 sps:$4 sm:$0xff]   ;;  %v2428_v12 = vld [vmem:[%s2875_s3 + $0x24] ss:$8 sps:$4 sm:$0xff]   ;;  %v1993_v13 = vld [vmem:[%s2874_s2 + $0x30] ss:$8 sps:$4 sm:$0xff]  }
  0x37   :  { %555 = vmatpush1.bf16.msra.mxu1 %v2415_v9  ;;  %v2436_v14 = vld [vmem:[%s2875_s3 + $0x20] ss:$8 sps:$4 sm:$0xff]   ;;  %v1994_v15 = vld [vmem:[%s2874_s2 + $0x24] ss:$8 sps:$4 sm:$0xff]   ;;  %v2445_v16 = vld [vmem:[%s2875_s3 + $0x14] ss:$8 sps:$4 sm:$0xff]  }
  0x38   :  { %338 = vmatpush1.bf16.msra.mxu0 %v1984_v4  ;;  %556 = vmatprep.subr.bf16.mxu1 %v2428_v12  ;;  %v2450_v17 = vld [vmem:[%s2875_s3 + $0x10] ss:$8 sps:$4 sm:$0xff]   ;;  %v2016_v18 = vld [vmem:[%s2872_s0 + $0x4] ss:$8 sps:$4 sm:$0xff]   ;;  %v1996_v19 = vld [vmem:[%s2874_s2 + $0x20] ss:$8 sps:$4 sm:$0xff]  }
  0x39   :  { %339 = vmatprep.subr.bf16.mxu0 %v1985_v5  ;;  %v2463_v20 = vld [vmem:[%s2875_s3 + $0x4] ss:$8 sps:$4 sm:$0xff]   ;;  %v1997_v21 = vld [vmem:[%s2874_s2 + $0x14] ss:$8 sps:$4 sm:$0xff]   ;;  %1835 = vmatprep.mubr.msk.bf16.mxu0 %vm303_vm0, %v2016_v18  ;;  %v2472_v22 = vld [vmem:[%s2875_s3] ss:$8 sps:$4 sm:$0xff]  }
  0x3a   :  { %v133_v23 = vld [vmem:[%s2874_s2 + $0x80] sm:$0xff]  ;;  %v2001_v24 = vld [vmem:[%s2874_s2 + $0x10] ss:$8 sps:$4 sm:$0xff]   ;;  %vm328_vm1 = vcmask 1043456   ;;  %v2513_v32 = vshrl.u32 %v136_v31, 7  ;;  %vm449_vm2 = vcmask 523264  }
  0x3b   :  { %557 = vmatpush1.bf16.msra.mxu1 %v2436_v14  ;;  %v2003_v25 = vld [vmem:[%s2874_s2 + $0x4] ss:$8 sps:$4 sm:$0xff]   ;;  %v1832_v26 = vcombine.low %v133_v23, %v133_v23  ;;  %v2007_v27 = vld [vmem:[%s2874_s2] ss:$8 sps:$4 sm:$0xff]   ;;  %v1833_v28 = vcombine.high %v133_v23, %v133_v23  ;;  %v2534_v57 = vld [vmem:[#allocation5] ss:$0 sm:$0xff] }
  0x3c   :  { %340 = vmatpush1.bf16.msra.mxu0 %v1987_v6  ;;  %558 = vmatprep.subr.bf16.mxu1 %v2445_v16  ;;  %v2014_v30 = vld [vmem:[%s2872_s0] ss:$8 sps:$4 sm:$0xff]   ;;  %v138_v33 = vsub.s32 0, %v2513_v32  ;;  %v142_v35 = vsub.s32 1, %v2513_v32  ;;  %v2020_v6 = vld [vmem:[%s2872_s0 + $0x14] ss:$8 sps:$4 sm:$0xff]  }
  0x3d   :  { %341 = vmatprep.subr.bf16.mxu0 %v1988_v7  ;;  %v330_v29 = vsel %vm328_vm1, %v1832_v26, 0  ;;  %v134_v34 = vld [vmem:[%s2876_s4] sm:$0x3]  ;;  %v2022_v7 = vld [vmem:[%s2872_s0 + $0x10] ss:$8 sps:$4 sm:$0xff]   ;;  %vm2295_vm3 = vmmov 0  }
  0x3e   :  { %v2522_v36 = vrot.slane %v134_v34, %v138_v33  ;;  %v2526_v38 = vrot.slane %v134_v34, %v142_v35  ;;  %vm1761_vm4 = vcmask 15360  }
  0x3f   :  { %559 = vmatpush1.bf16.msra.mxu1 %v2450_v17 }
  0x40   :  { %342 = vmatpush1.bf16.msra.mxu0 %v1990_v10  ;;  %560 = vmatprep.subr.bf16.mxu1 %v2463_v20 }
  0x41   :  { %343 = vmatprep.subr.bf16.mxu0 %v1991_v11 }
  0x43   :  { %561 = vmatpush1.bf16.msra.mxu1 %v2472_v22 }
  0x44   :  { %344 = vmatpush1.bf16.msra.mxu0 %v1993_v13  ;;  %649 = vmatprep.subr.bf16.mxu1 %v2410_v8 }
  0x45   :  { %345 = vmatprep.subr.bf16.mxu0 %v1994_v15 }
  0x46   :  { %579 = vmatmul.mubr.bf16.vlgmr.msra.gmra.mxu1 %v2293_v0 }
  0x47   :  { %650 = vmatpush1.bf16.msra.mxu1 %v2415_v9  ;;  %673 = vmatprep.mubr.bf16.mxu1 %v2293_v0 }
  0x48   :  { %346 = vmatpush1.bf16.msra.mxu0 %v1996_v19  ;;  %651 = vmatprep.subr.bf16.mxu1 %v2428_v12 }
  0x49   :  { %347 = vmatprep.subr.bf16.mxu0 %v1997_v21 }
  0x4b   :  { %652 = vmatpush1.bf16.msra.mxu1 %v2436_v14 }
  0x4c   :  { %348 = vmatpush1.bf16.msra.mxu0 %v2001_v24  ;;  %653 = vmatprep.subr.bf16.mxu1 %v2445_v16 }
  0x4d   :  { %349 = vmatprep.subr.bf16.mxu0 %v2003_v25 }
  0x4f   :  { %654 = vmatpush1.bf16.msra.mxu1 %v2450_v17 }
  0x50   :  { %350 = vmatpush1.bf16.msra.mxu0 %v2007_v27  ;;  %655 = vmatprep.subr.bf16.mxu1 %v2463_v20 }
  0x51   :  { %1834 = vmatprep.subr.msk.bf16.mxu0 %vm328_vm1, %v1833_v28 }
  0x53   :  { %656 = vmatpush1.bf16.msra.mxu1 %v2472_v22 }
  0x54   :  { %366 = vmatpush2.bf16.msra.mxu0 %v330_v29  ;;  %744 = vmatprep.subr.bf16.mxu1 %v2410_v8 }
  0x55   :  { %1124 = vmatprep.subr.bf16.mxu0 %v2410_v8 }
  0x57   :  { %368 = vmatmul.mubr.bf16.vlgmr.msra.gmra.mxu0 %v2014_v30 }
  0x58   :  { %1125 = vmatpush1.bf16.msra.mxu0 %v2415_v9  ;;  %1836 = vmatprep.mubr.msk.bf16.mxu0 %vm303_vm0, %v2020_v6 }
  0x59   :  { %1126 = vmatprep.subr.bf16.mxu0 %v2428_v12 }
  0x5c   :  { %1127 = vmatpush1.bf16.msra.mxu0 %v2436_v14 }
  0x5d   :  { %1128 = vmatprep.subr.bf16.mxu0 %v2445_v16 }
  0x5f   :  { %378 = vmatmul.mubr.bf16.gmra.mxu0 %v2022_v7 }
  0x60   :  { %1129 = vmatpush1.bf16.msra.mxu0 %v2450_v17 }
  0x61   :  { %1130 = vmatprep.subr.bf16.mxu0 %v2463_v20 }
  0x64   :  { %1131 = vmatpush1.bf16.msra.mxu0 %v2472_v22 }
 0x106   :  { %v580_v37 = vpop.f32.mrf.mxu1 }
 0x108   :  { %v582_v42 = vpop.f32.mrf.mxu1 }
 0x109   :  { %v603_v58 = vadd.f32 %v2534_v57, %v582_v42 }
 0x10a   :  { %v584_v49 = vpop.f32.mrf.mxu1 }
 0x10c   :  { %v586_v60 = vpop.f32.mrf.mxu1 }
 0x10d   :  { %v604_v63 = vadd.f32 %v2534_v57, %v586_v60 }
 0x117   :  { %v369_v39 = vpop.f32.mrf.mxu0 }
 0x118   :  { %v370_v40 = vadd.f32 %v369_v39, %v2522_v36 }
 0x119   :  { %v371_v41 = vpop.f32.mrf.mxu0 }
 0x11a   :  { %v372_v43 = vadd.f32 %v371_v41, %v2526_v38  ;;  %v589_v44 = vadd.f32 %v580_v37, %v370_v40 }
 0x11b   :  { %v373_v45 = vpop.f32.mrf.mxu0 }
 0x11c   :  { %450 = vst.msk [vmem:[#allocation2 + $0x8] sm:$0xff] %vm449_vm2, %v372_v43  ;;  %v374_v46 = vadd.f32 %v373_v45, %v2522_v36  ;;  %v1852_v47 = vmul.f32 -1.442695, %v589_v44 }
 0x11d   :  { %v375_v48 = vpop.f32.mrf.mxu0 }
 0x11e   :  { %2082 = vpow2.f32 %v1852_v47  ;;  %v376_v50 = vadd.f32 %v375_v48, %v2526_v38  ;;  %v590_v51 = vadd.f32 %v584_v49, %v374_v46 }
 0x11f   :  { %v379_v29 = vpop.f32.mrf.mxu0 }
 0x120   :  { %452 = vst.msk [vmem:[#allocation2 + $0x18] sm:$0xff] %vm449_vm2, %v376_v50  ;;  %v1853_v52 = vmul.f32 -1.442695, %v590_v51  ;;  %v380_v30 = vadd.f32 %v379_v29, %v2522_v36 }
 0x121   :  { %v381_v31 = vpop.f32.mrf.mxu0 }
 0x122   :  { %2084 = vpow2.f32 %v1853_v52  ;;  %v382_v34 = vadd.f32 %v381_v31, %v2526_v38 }
 0x123   :  { %v500_v62 = vld [vmem:[#allocation2 + $0x8] sm:$0xff]  ;;  %v383_v37 = vpop.f32.mrf.mxu0 }
 0x124   :  { %454 = vst.msk [vmem:[#allocation2 + $0x28] sm:$0xff] %vm449_vm2, %v382_v34  ;;  %v384_v39 = vadd.f32 %v383_v37, %v2522_v36 }
 0x125   :  { %v385_v40 = vpop.f32.mrf.mxu0 }
 0x126   :  { %v386_v41 = vadd.f32 %v385_v40, %v2526_v38 }
 0x127   :  { %v502_v4 = vld [vmem:[#allocation2 + $0x18] sm:$0xff] }
 0x128   :  { %456 = vst.msk [vmem:[#allocation2 + $0x38] sm:$0xff] %vm449_vm2, %v386_v41 }
 0x12b   :  { %v2083_v53 = vpop.eup %2082 }
 0x12c   :  { %v597_v54 = vadd.f32 1.0, %v2083_v53 }
 0x12e   :  { %2086 = vrcp.f32 %v597_v54 }
 0x12f   :  { %v2085_v55 = vpop.eup %2084 }
 0x130   :  { %v598_v56 = vadd.f32 1.0, %v2085_v55 }
 0x132   :  { %2088 = vrcp.f32 %v598_v56 }
 0x13b   :  { %v2087_v59 = vpop.eup %2086 }
 0x13c   :  { %v605_v61 = vmul.f32 %v2087_v59, %v603_v58  ;;  %v611_v15 = vsub.f32 1.0, %v2087_v59  ;;  %v623_v24 = vmul.f32 0.0, %v2087_v59  ;;  %v631_v59 = vld [vmem:[#allocation2 + $0x28] sm:$0xff] }
 0x13e   :  { %v607_v1 = vadd.f32 %v605_v61, %v500_v62 }
 0x13f   :  { %v2089_v2 = vpop.eup %2088 }
 0x140   :  { %v606_v3 = vmul.f32 %v2089_v2, %v604_v63  ;;  %2090 = vtanh.f32 %v607_v1  ;;  %v612_v19 = vsub.f32 1.0, %v2089_v2  ;;  %v624_v25 = vmul.f32 0.0, %v2089_v2  ;;  %v633_v1 = vld [vmem:[#allocation2 + $0x38] sm:$0xff] }
 0x142   :  { %v608_v5 = vadd.f32 %v606_v3, %v502_v4  ;;  %v2023_v3 = vld [vmem:[%s2872_s0 + $0x24] ss:$8 sps:$4 sm:$0xff]   ;;  %v2025_v4 = vld [vmem:[%s2872_s0 + $0x20] ss:$8 sps:$4 sm:$0xff]  }
 0x143   :  { %1837 = vmatprep.mubr.msk.bf16.mxu0 %vm303_vm0, %v2023_v3 }
 0x144   :  { %2092 = vtanh.f32 %v608_v5  ;;  %388 = vmatmul.mubr.bf16.gmra.mxu0 %v2025_v4 }
 0x14d   :  { %v2091_v10 = vpop.eup %2090 }
 0x14e   :  { %615 = vrot.lane.b32.xlu0 %v2091_v10, %s2291_s1 }
 0x151   :  { %v2093_v11 = vpop.eup %2092 }
 0x152   :  { %617 = vrot.lane.b32.xlu0 %v2093_v11, %s2291_s1 }
 0x1c0   :  { %v616_v13 = vpop.permute.xlu0 %615 }
 0x1c1   :  { %v621_v18 = vmul.f32 %v616_v13, %v611_v15 }
 0x1c3   :  { %v2547_v26 = vadd.f32 %v623_v24, %v621_v18 }
 0x1c4   :  { %v618_v21 = vpop.permute.xlu0 %617 }
 0x1c5   :  { %v622_v23 = vmul.f32 %v618_v21, %v612_v19 }
 0x1c7   :  { %v2549_v27 = vadd.f32 %v624_v25, %v622_v23 }
 0x1c9   :  { %v634_v28 = vpack.c.bf16 %v2549_v27, %v2547_v26 }
 0x1cb   :  { %636 = vrot.lane.b32.xlu1 %v634_v28, %s2291_s1 }
 0x204   :  { %v389_v28 = vpop.f32.mrf.mxu0 }
 0x205   :  { %v390_v29 = vadd.f32 %v389_v28, %v2522_v36 }
 0x23d   :  { %v637_v42 = vpop.permute.xlu1 %636 }
 0x23e   :  { %1854 = vmatmul.mubr.msk.bf16.vlgmr.msra.gmra.mxu1 %vm449_vm2, %v637_v42 }
 0x23f   :  { %745 = vmatpush1.bf16.msra.mxu1 %v2415_v9  ;;  %768 = vmatprep.mubr.bf16.mxu1 %v2293_v0 }
 0x240   :  { %746 = vmatprep.subr.bf16.mxu1 %v2428_v12 }
 0x243   :  { %747 = vmatpush1.bf16.msra.mxu1 %v2436_v14 }
 0x244   :  { %748 = vmatprep.subr.bf16.mxu1 %v2445_v16 }
 0x247   :  { %749 = vmatpush1.bf16.msra.mxu1 %v2450_v17 }
 0x248   :  { %750 = vmatprep.subr.bf16.mxu1 %v2463_v20 }
 0x24b   :  { %751 = vmatpush1.bf16.msra.mxu1 %v2472_v22 }
 0x24c   :  { %839 = vmatprep.subr.bf16.mxu1 %v2410_v8 }
 0x2fe   :  { %v675_v43 = vpop.f32.mrf.mxu1 }
 0x2ff   :  { %v684_v44 = vadd.f32 %v675_v43, %v380_v30  ;;  %v391_v30 = vpop.f32.mrf.mxu0 }
 0x300   :  { %v677_v45 = vpop.f32.mrf.mxu1  ;;  %v392_v31 = vadd.f32 %v391_v30, %v2526_v38 }
 0x301   :  { %v1855_v46 = vmul.f32 -1.442695, %v684_v44  ;;  %v698_v54 = vadd.f32 %v2534_v57, %v677_v45  ;;  %v393_v34 = vpop.f32.mrf.mxu0 }
 0x302   :  { %v679_v47 = vpop.f32.mrf.mxu1  ;;  %458 = vst.msk [vmem:[#allocation2 + $0x48] sm:$0xff] %vm449_vm2, %v392_v31 }
 0x303   :  { %2094 = vpow2.f32 %v1855_v46  ;;  %v685_v48 = vadd.f32 %v679_v47, %v384_v39 }
 0x304   :  { %v681_v56 = vpop.f32.mrf.mxu1 }
 0x305   :  { %v1856_v49 = vmul.f32 -1.442695, %v685_v48  ;;  %v699_v61 = vadd.f32 %v2534_v57, %v681_v56 }
 0x307   :  { %2096 = vpow2.f32 %v1856_v49 }
 0x310   :  { %v2095_v50 = vpop.eup %2094 }
 0x311   :  { %v692_v51 = vadd.f32 1.0, %v2095_v50 }
 0x313   :  { %2098 = vrcp.f32 %v692_v51 }
 0x314   :  { %v2097_v52 = vpop.eup %2096 }
 0x315   :  { %v693_v53 = vadd.f32 1.0, %v2097_v52 }
 0x317   :  { %2100 = vrcp.f32 %v693_v53 }
 0x320   :  { %v2099_v55 = vpop.eup %2098 }
 0x321   :  { %v700_v58 = vmul.f32 %v2099_v55, %v698_v54  ;;  %v706_v10 = vsub.f32 1.0, %v2099_v55  ;;  %v718_v18 = vmul.f32 %v2099_v55, %v2547_v26  ;;  %v394_v26 = vadd.f32 %v393_v34, %v2522_v36  ;;  %v726_v55 = vld [vmem:[#allocation2 + $0x48] sm:$0xff] }
 0x323   :  { %v702_v60 = vadd.f32 %v700_v58, %v631_v59 }
 0x324   :  { %v2101_v62 = vpop.eup %2100 }
 0x325   :  { %2102 = vtanh.f32 %v702_v60  ;;  %v701_v63 = vmul.f32 %v2101_v62, %v699_v61  ;;  %v707_v13 = vsub.f32 1.0, %v2101_v62  ;;  %v719_v19 = vmul.f32 %v2101_v62, %v2549_v27  ;;  %v395_v27 = vpop.f32.mrf.mxu0 }
 0x326   :  { %v396_v37 = vadd.f32 %v395_v27, %v2526_v38 }
 0x327   :  { %v703_v2 = vadd.f32 %v701_v63, %v633_v1  ;;  %v2026_v63 = vld [vmem:[%s2872_s0 + $0x34] ss:$8 sps:$4 sm:$0xff]   ;;  %v2028_v1 = vld [vmem:[%s2872_s0 + $0x30] ss:$8 sps:$4 sm:$0xff]  }
 0x328   :  { %460 = vst.msk [vmem:[#allocation2 + $0x58] sm:$0xff] %vm449_vm2, %v396_v37  ;;  %1838 = vmatprep.mubr.msk.bf16.mxu0 %vm303_vm0, %v2026_v63 }
 0x329   :  { %2104 = vtanh.f32 %v703_v2  ;;  %398 = vmatmul.mubr.bf16.gmra.mxu0 %v2028_v1 }
 0x32f   :  { %v728_v61 = vld [vmem:[#allocation2 + $0x58] sm:$0xff] }
 0x332   :  { %v2103_v5 = vpop.eup %2102 }
 0x333   :  { %710 = vrot.lane.b32.xlu1 %v2103_v5, %s2291_s1 }
 0x336   :  { %v2105_v6 = vpop.eup %2104 }
 0x337   :  { %712 = vrot.lane.b32.xlu0 %v2105_v6, %s2291_s1 }
 0x3a5   :  { %v711_v7 = vpop.permute.xlu1 %710 }
 0x3a6   :  { %v716_v11 = vmul.f32 %v711_v7, %v706_v10 }
 0x3a8   :  { %v2583_v23 = vadd.f32 %v718_v18, %v716_v11 }
 0x3a9   :  { %v713_v15 = vpop.permute.xlu0 %712 }
 0x3aa   :  { %v717_v21 = vmul.f32 %v713_v15, %v707_v13 }
 0x3ac   :  { %v2585_v24 = vadd.f32 %v719_v19, %v717_v21 }
 0x3ae   :  { %v729_v25 = vpack.c.bf16 %v2585_v24, %v2583_v23 }
 0x3b0   :  { %731 = vrot.lane.b32.xlu1 %v729_v25, %s2291_s1 }
 0x3e9   :  { %v399_v25 = vpop.f32.mrf.mxu0 }
 0x3ea   :  { %v400_v28 = vadd.f32 %v399_v25, %v2522_v36 }
 0x422   :  { %v732_v39 = vpop.permute.xlu1 %731 }
 0x423   :  { %1857 = vmatmul.mubr.msk.bf16.vlgmr.msra.gmra.mxu1 %vm449_vm2, %v732_v39 }
 0x424   :  { %840 = vmatpush1.bf16.msra.mxu1 %v2415_v9  ;;  %863 = vmatprep.mubr.bf16.mxu1 %v2293_v0 }
 0x425   :  { %841 = vmatprep.subr.bf16.mxu1 %v2428_v12 }
 0x428   :  { %842 = vmatpush1.bf16.msra.mxu1 %v2436_v14 }
 0x429   :  { %843 = vmatprep.subr.bf16.mxu1 %v2445_v16 }
 0x42c   :  { %844 = vmatpush1.bf16.msra.mxu1 %v2450_v17 }
 0x42d   :  { %845 = vmatprep.subr.bf16.mxu1 %v2463_v20 }
 0x430   :  { %846 = vmatpush1.bf16.msra.mxu1 %v2472_v22 }
 0x431   :  { %934 = vmatprep.subr.bf16.mxu1 %v2410_v8 }
 0x4e3   :  { %v770_v40 = vpop.f32.mrf.mxu1 }
 0x4e4   :  { %v779_v41 = vadd.f32 %v770_v40, %v390_v29  ;;  %v401_v29 = vpop.f32.mrf.mxu0 }
 0x4e5   :  { %v772_v42 = vpop.f32.mrf.mxu1  ;;  %v402_v30 = vadd.f32 %v401_v29, %v2526_v38 }
 0x4e6   :  { %v1858_v43 = vmul.f32 -1.442695, %v779_v41  ;;  %v793_v51 = vadd.f32 %v2534_v57, %v772_v42  ;;  %v403_v31 = vpop.f32.mrf.mxu0 }
 0x4e7   :  { %v774_v44 = vpop.f32.mrf.mxu1  ;;  %462 = vst.msk [vmem:[#allocation2 + $0x68] sm:$0xff] %vm449_vm2, %v402_v30 }
 0x4e8   :  { %2106 = vpow2.f32 %v1858_v43  ;;  %v780_v45 = vadd.f32 %v774_v44, %v394_v26 }
 0x4e9   :  { %v776_v53 = vpop.f32.mrf.mxu1 }
 0x4ea   :  { %v1859_v46 = vmul.f32 -1.442695, %v780_v45  ;;  %v794_v58 = vadd.f32 %v2534_v57, %v776_v53 }
 0x4ec   :  { %2108 = vpow2.f32 %v1859_v46 }
 0x4f5   :  { %v2107_v47 = vpop.eup %2106 }
 0x4f6   :  { %v787_v48 = vadd.f32 1.0, %v2107_v47 }
 0x4f8   :  { %2110 = vrcp.f32 %v787_v48 }
 0x4f9   :  { %v2109_v49 = vpop.eup %2108 }
 0x4fa   :  { %v788_v50 = vadd.f32 1.0, %v2109_v49 }
 0x4fc   :  { %2112 = vrcp.f32 %v788_v50 }
 0x505   :  { %v2111_v52 = vpop.eup %2110 }
 0x506   :  { %v795_v54 = vmul.f32 %v2111_v52, %v793_v51  ;;  %v801_v5 = vsub.f32 1.0, %v2111_v52  ;;  %v813_v11 = vmul.f32 %v2111_v52, %v2583_v23  ;;  %v404_v23 = vadd.f32 %v403_v31, %v2522_v36  ;;  %v821_v52 = vld [vmem:[#allocation2 + $0x68] sm:$0xff] }
 0x508   :  { %v797_v56 = vadd.f32 %v795_v54, %v726_v55 }
 0x509   :  { %v2113_v59 = vpop.eup %2112 }
 0x50a   :  { %2114 = vtanh.f32 %v797_v56  ;;  %v796_v60 = vmul.f32 %v2113_v59, %v794_v58  ;;  %v802_v7 = vsub.f32 1.0, %v2113_v59  ;;  %v814_v13 = vmul.f32 %v2113_v59, %v2585_v24  ;;  %v405_v24 = vpop.f32.mrf.mxu0 }
 0x50b   :  { %v406_v34 = vadd.f32 %v405_v24, %v2526_v38 }
 0x50c   :  { %v798_v62 = vadd.f32 %v796_v60, %v728_v61  ;;  %v2029_v60 = vld [vmem:[%s2872_s0 + $0x44] ss:$8 sps:$4 sm:$0xff]   ;;  %v2031_v61 = vld [vmem:[%s2872_s0 + $0x40] ss:$8 sps:$4 sm:$0xff]  }
 0x50d   :  { %464 = vst.msk [vmem:[#allocation2 + $0x78] sm:$0xff] %vm449_vm2, %v406_v34  ;;  %1839 = vmatprep.mubr.msk.bf16.mxu0 %vm303_vm0, %v2029_v60 }
 0x50e   :  { %2116 = vtanh.f32 %v798_v62  ;;  %408 = vmatmul.mubr.bf16.gmra.mxu0 %v2031_v61 }
 0x514   :  { %v823_v58 = vld [vmem:[#allocation2 + $0x78] sm:$0xff] }
 0x517   :  { %v2115_v2 = vpop.eup %2114 }
 0x518   :  { %805 = vrot.lane.b32.xlu0 %v2115_v2, %s2291_s1 }
 0x51b   :  { %v2117_v3 = vpop.eup %2116 }
 0x51c   :  { %807 = vrot.lane.b32.xlu1 %v2117_v3, %s2291_s1 }
 0x58a   :  { %v806_v4 = vpop.permute.xlu0 %805 }
 0x58b   :  { %v811_v6 = vmul.f32 %v806_v4, %v801_v5 }
 0x58d   :  { %v2619_v18 = vadd.f32 %v813_v11, %v811_v6 }
 0x58e   :  { %v808_v10 = vpop.permute.xlu1 %807 }
 0x58f   :  { %v812_v15 = vmul.f32 %v808_v10, %v802_v7 }
 0x591   :  { %v2621_v19 = vadd.f32 %v814_v13, %v812_v15 }
 0x593   :  { %v824_v21 = vpack.c.bf16 %v2621_v19, %v2619_v18 }
 0x595   :  { %826 = vrot.lane.b32.xlu0 %v824_v21, %s2291_s1 }
 0x5ce   :  { %v409_v21 = vpop.f32.mrf.mxu0 }
 0x5cf   :  { %v410_v25 = vadd.f32 %v409_v21, %v2522_v36 }
 0x607   :  { %v827_v26 = vpop.permute.xlu0 %826 }
 0x608   :  { %1860 = vmatmul.mubr.msk.bf16.vlgmr.msra.gmra.mxu1 %vm449_vm2, %v827_v26 }
 0x609   :  { %935 = vmatpush1.bf16.msra.mxu1 %v2415_v9  ;;  %958 = vmatprep.mubr.bf16.mxu1 %v2293_v0 }
 0x60a   :  { %936 = vmatprep.subr.bf16.mxu1 %v2428_v12 }
 0x60d   :  { %937 = vmatpush1.bf16.msra.mxu1 %v2436_v14 }
 0x60e   :  { %938 = vmatprep.subr.bf16.mxu1 %v2445_v16 }
 0x611   :  { %939 = vmatpush1.bf16.msra.mxu1 %v2450_v17 }
 0x612   :  { %940 = vmatprep.subr.bf16.mxu1 %v2463_v20 }
 0x615   :  { %941 = vmatpush1.bf16.msra.mxu1 %v2472_v22 }
 0x616   :  { %1029 = vmatprep.subr.bf16.mxu1 %v2410_v8 }
 0x6c8   :  { %v865_v27 = vpop.f32.mrf.mxu1 }
 0x6c9   :  { %v874_v37 = vadd.f32 %v865_v27, %v400_v28  ;;  %v411_v28 = vpop.f32.mrf.mxu0 }
 0x6ca   :  { %v867_v39 = vpop.f32.mrf.mxu1  ;;  %v412_v29 = vadd.f32 %v411_v28, %v2526_v38 }
 0x6cb   :  { %v1861_v40 = vmul.f32 -1.442695, %v874_v37  ;;  %v888_v48 = vadd.f32 %v2534_v57, %v867_v39  ;;  %v413_v30 = vpop.f32.mrf.mxu0 }
 0x6cc   :  { %v869_v41 = vpop.f32.mrf.mxu1  ;;  %466 = vst.msk [vmem:[#allocation2 + $0x88] sm:$0xff] %vm449_vm2, %v412_v29 }
 0x6cd   :  { %2118 = vpow2.f32 %v1861_v40  ;;  %v875_v42 = vadd.f32 %v869_v41, %v404_v23 }
 0x6ce   :  { %v871_v50 = vpop.f32.mrf.mxu1 }
 0x6cf   :  { %v1862_v43 = vmul.f32 -1.442695, %v875_v42  ;;  %v889_v54 = vadd.f32 %v2534_v57, %v871_v50 }
 0x6d1   :  { %2120 = vpow2.f32 %v1862_v43 }
 0x6da   :  { %v2119_v44 = vpop.eup %2118 }
 0x6db   :  { %v882_v45 = vadd.f32 1.0, %v2119_v44 }
 0x6dd   :  { %2122 = vrcp.f32 %v882_v45 }
 0x6de   :  { %v2121_v46 = vpop.eup %2120 }
 0x6df   :  { %v883_v47 = vadd.f32 1.0, %v2121_v46 }
 0x6e1   :  { %2124 = vrcp.f32 %v883_v47 }
 0x6ea   :  { %v2123_v49 = vpop.eup %2122 }
 0x6eb   :  { %v890_v51 = vmul.f32 %v2123_v49, %v888_v48  ;;  %v896_v2 = vsub.f32 1.0, %v2123_v49  ;;  %v908_v6 = vmul.f32 %v2123_v49, %v2619_v18  ;;  %v414_v18 = vadd.f32 %v413_v30, %v2522_v36  ;;  %v916_v48 = vld [vmem:[#allocation2 + $0x88] sm:$0xff] }
 0x6ed   :  { %v892_v53 = vadd.f32 %v890_v51, %v821_v52 }
 0x6ee   :  { %v2125_v55 = vpop.eup %2124 }
 0x6ef   :  { %2126 = vtanh.f32 %v892_v53  ;;  %v891_v56 = vmul.f32 %v2125_v55, %v889_v54  ;;  %v897_v4 = vsub.f32 1.0, %v2125_v55  ;;  %v909_v7 = vmul.f32 %v2125_v55, %v2621_v19  ;;  %v415_v19 = vpop.f32.mrf.mxu0  ;;  %v2032_v55 = vld [vmem:[%s2872_s0 + $0x54] ss:$8 sps:$4 sm:$0xff]  }
 0x6f0   :  { %v416_v31 = vadd.f32 %v415_v19, %v2526_v38  ;;  %1840 = vmatprep.mubr.msk.bf16.mxu0 %vm303_vm0, %v2032_v55 }
 0x6f1   :  { %v893_v59 = vadd.f32 %v891_v56, %v823_v58  ;;  %v2034_v56 = vld [vmem:[%s2872_s0 + $0x50] ss:$8 sps:$4 sm:$0xff]  }
 0x6f2   :  { %468 = vst.msk [vmem:[#allocation2 + $0x98] sm:$0xff] %vm449_vm2, %v416_v31  ;;  %418 = vmatmul.mubr.bf16.gmra.mxu0 %v2034_v56 }
 0x6f3   :  { %2128 = vtanh.f32 %v893_v59 }
 0x6f9   :  { %v918_v53 = vld [vmem:[#allocation2 + $0x98] sm:$0xff] }
 0x6fc   :  { %v2127_v62 = vpop.eup %2126 }
 0x6fd   :  { %900 = vrot.lane.b32.xlu1 %v2127_v62, %s2291_s1 }
 0x700   :  { %v2129_v63 = vpop.eup %2128 }
 0x701   :  { %902 = vrot.lane.b32.xlu0 %v2129_v63, %s2291_s1 }
 0x76f   :  { %v901_v1 = vpop.permute.xlu1 %900 }
 0x770   :  { %v906_v3 = vmul.f32 %v901_v1, %v896_v2 }
 0x772   :  { %v2655_v11 = vadd.f32 %v908_v6, %v906_v3 }
 0x773   :  { %v903_v5 = vpop.permute.xlu0 %902 }
 0x774   :  { %v907_v10 = vmul.f32 %v903_v5, %v897_v4 }
 0x776   :  { %v2657_v13 = vadd.f32 %v909_v7, %v907_v10 }
 0x778   :  { %v919_v15 = vpack.c.bf16 %v2657_v13, %v2655_v11 }
 0x77a   :  { %921 = vrot.lane.b32.xlu1 %v919_v15, %s2291_s1 }
 0x7b2   :  { %v419_v10 = vpop.f32.mrf.mxu0 }
 0x7b3   :  { %v420_v15 = vadd.f32 %v419_v10, %v2522_v36 }
 0x7b4   :  { %v421_v21 = vpop.f32.mrf.mxu0 }
 0x7b6   :  { %v423_v28 = vpop.f32.mrf.mxu0 }
 0x7ec   :  { %v922_v23 = vpop.permute.xlu1 %921 }
 0x7ed   :  { %1863 = vmatmul.mubr.msk.bf16.vlgmr.msra.gmra.mxu1 %vm449_vm2, %v922_v23 }
 0x7ee   :  { %1030 = vmatpush1.bf16.msra.mxu1 %v2415_v9  ;;  %1053 = vmatprep.mubr.bf16.mxu1 %v2293_v0 }
 0x7ef   :  { %1031 = vmatprep.subr.bf16.mxu1 %v2428_v12 }
 0x7f2   :  { %1032 = vmatpush1.bf16.msra.mxu1 %v2436_v14 }
 0x7f3   :  { %1033 = vmatprep.subr.bf16.mxu1 %v2445_v16 }
 0x7f6   :  { %1034 = vmatpush1.bf16.msra.mxu1 %v2450_v17 }
 0x7f7   :  { %1035 = vmatprep.subr.bf16.mxu1 %v2463_v20 }
 0x7fa   :  { %1036 = vmatpush1.bf16.msra.mxu1 %v2472_v22 }
 0x7fb   :  { %1219 = vmatprep.subr.bf16.mxu1 %v2410_v8 }
 0x8ad   :  { %v960_v24 = vpop.f32.mrf.mxu1 }
 0x8ae   :  { %v969_v34 = vadd.f32 %v960_v24, %v410_v25  ;;  %v422_v25 = vadd.f32 %v421_v21, %v2526_v38 }
 0x8af   :  { %v962_v26 = vpop.f32.mrf.mxu1 }
 0x8b0   :  { %v1864_v27 = vmul.f32 -1.442695, %v969_v34  ;;  %v983_v45 = vadd.f32 %v2534_v57, %v962_v26  ;;  %470 = vst.msk [vmem:[#allocation2 + $0xa8] sm:$0xff] %vm449_vm2, %v422_v25 }
 0x8b1   :  { %v964_v37 = vpop.f32.mrf.mxu1 }
 0x8b2   :  { %2130 = vpow2.f32 %v1864_v27  ;;  %v970_v39 = vadd.f32 %v964_v37, %v414_v18 }
 0x8b3   :  { %v966_v47 = vpop.f32.mrf.mxu1 }
 0x8b4   :  { %v1865_v40 = vmul.f32 -1.442695, %v970_v39  ;;  %v984_v50 = vadd.f32 %v2534_v57, %v966_v47  ;;  %v2038_v47 = vld [vmem:[%s2872_s0 + $0x74] ss:$8 sps:$4 sm:$0xff]  }
 0x8b6   :  { %2132 = vpow2.f32 %v1865_v40 }
 0x8b7   :  { %v1011_v37 = vld [vmem:[#allocation2 + $0xa8] sm:$0xff] }
 0x8bf   :  { %v2131_v41 = vpop.eup %2130 }
 0x8c0   :  { %v977_v42 = vadd.f32 1.0, %v2131_v41 }
 0x8c2   :  { %2134 = vrcp.f32 %v977_v42 }
 0x8c3   :  { %v2133_v43 = vpop.eup %2132 }
 0x8c4   :  { %v978_v44 = vadd.f32 1.0, %v2133_v43 }
 0x8c6   :  { %2136 = vrcp.f32 %v978_v44 }
 0x8cf   :  { %v2135_v46 = vpop.eup %2134 }
 0x8d0   :  { %v985_v8 = vmul.f32 %v2135_v46, %v983_v45  ;;  %v991_v61 = vsub.f32 1.0, %v2135_v46  ;;  %v1003_v2 = vmul.f32 %v2135_v46, %v2655_v11  ;;  %v424_v11 = vadd.f32 %v423_v28, %v2522_v36  ;;  %v2035_v45 = vld [vmem:[%s2872_s0 + $0x64] ss:$8 sps:$4 sm:$0xff]   ;;  %v2037_v46 = vld [vmem:[%s2872_s0 + $0x60] ss:$8 sps:$4 sm:$0xff]  }
 0x8d1   :  { %1841 = vmatprep.mubr.msk.bf16.mxu0 %vm303_vm0, %v2035_v45 }
 0x8d2   :  { %v987_v49 = vadd.f32 %v985_v8, %v916_v48  ;;  %428 = vmatmul.mubr.bf16.gmra.mxu0 %v2037_v46 }
 0x8d3   :  { %v2137_v51 = vpop.eup %2136  ;;  %1842 = vmatprep.mubr.msk.bf16.mxu0 %vm303_vm0, %v2038_v47 }
 0x8d4   :  { %2138 = vtanh.f32 %v987_v49  ;;  %v986_v52 = vmul.f32 %v2137_v51, %v984_v50  ;;  %v992_v63 = vsub.f32 1.0, %v2137_v51  ;;  %v1004_v3 = vmul.f32 %v2137_v51, %v2657_v13  ;;  %v425_v13 = vpop.f32.mrf.mxu0  ;;  %v2040_v49 = vld [vmem:[%s2872_s0 + $0x70] ss:$8 sps:$4 sm:$0xff]  }
 0x8d5   :  { %v426_v29 = vadd.f32 %v425_v13, %v2526_v38 }
 0x8d6   :  { %v988_v54 = vadd.f32 %v986_v52, %v918_v53 }
 0x8d7   :  { %472 = vst.msk [vmem:[#allocation2 + $0xb8] sm:$0xff] %vm449_vm2, %v426_v29  ;;  %v2041_v29 = vld [vmem:[#allocation7 + $0x70] ss:$8 sps:$4 sm:$0xff]  }
 0x8d8   :  { %2140 = vtanh.f32 %v988_v54 }
 0x8da   :  { %438 = vmatmul.mubr.bf16.gmra.mxu0 %v2040_v49 }
 0x8db   :  { %1148 = vmatprep.mubr.bf16.mxu0 %v2293_v0 }
 0x8de   :  { %v1013_v43 = vld [vmem:[#allocation2 + $0xb8] sm:$0xff] }
 0x8e1   :  { %v2139_v58 = vpop.eup %2138 }
 0x8e2   :  { %995 = vrot.lane.b32.xlu0 %v2139_v58, %s2291_s1 }
 0x8e5   :  { %v2141_v59 = vpop.eup %2140 }
 0x8e6   :  { %997 = vrot.lane.b32.xlu1 %v2141_v59, %s2291_s1 }
 0x954   :  { %v996_v60 = vpop.permute.xlu0 %995 }
 0x955   :  { %v1001_v62 = vmul.f32 %v996_v60, %v991_v61 }
 0x957   :  { %v2691_v5 = vadd.f32 %v1003_v2, %v1001_v62 }
 0x958   :  { %v998_v1 = vpop.permute.xlu1 %997 }
 0x959   :  { %v1002_v4 = vmul.f32 %v998_v1, %v992_v63 }
 0x95b   :  { %v2693_v6 = vadd.f32 %v1004_v3, %v1002_v4 }
 0x95d   :  { %v1014_v7 = vpack.c.bf16 %v2693_v6, %v2691_v5 }
 0x95f   :  { %1016 = vrot.lane.b32.xlu0 %v1014_v7, %s2291_s1 }
 0x9d1   :  { %v1017_v30 = vpop.permute.xlu0 %1016 }
 0x9d2   :  { %1866 = vmatmul.mubr.msk.bf16.vlgmr.msra.gmra.mxu1 %vm449_vm2, %v1017_v30  ;;  %v2043_v30 = vld [vmem:[#allocation7 + $0x74] ss:$8 sps:$4 sm:$0xff]  }
 0x9d3   :  { %1220 = vmatpush1.bf16.msra.mxu1 %v2415_v9  ;;  %1243 = vmatprep.mubr.bf16.mxu1 %v2293_v0  ;;  %v429_v0 = vpop.f32.mrf.mxu0 }
 0x9d4   :  { %1221 = vmatprep.subr.bf16.mxu1 %v2428_v12  ;;  %v2742_v62 = vadd.f32 %v429_v0, %v2522_v36  ;;  %1426 = vmatprep.subr.bf16.mxu0 %v2043_v30 }
 0x9d5   :  { %v431_v63 = vpop.f32.mrf.mxu0 }
 0x9d6   :  { %v432_v1 = vadd.f32 %v431_v63, %v2526_v38 }
 0x9d7   :  { %1222 = vmatpush1.bf16.msra.mxu1 %v2436_v14  ;;  %v433_v2 = vpop.f32.mrf.mxu0 }
 0x9d8   :  { %1223 = vmatprep.subr.bf16.mxu1 %v2445_v16  ;;  %474 = vst.msk [vmem:[#allocation2 + $0xc8] sm:$0xff] %vm449_vm2, %v432_v1  ;;  %v2747_v3 = vadd.f32 %v433_v2, %v2522_v36 }
 0x9d9   :  { %v435_v4 = vpop.f32.mrf.mxu0 }
 0x9db   :  { %1224 = vmatpush1.bf16.msra.mxu1 %v2450_v17 }
 0x9dc   :  { %1225 = vmatprep.subr.bf16.mxu1 %v2463_v20 }
 0x9df   :  { %1226 = vmatpush1.bf16.msra.mxu1 %v2472_v22 }
 0xa92   :  { %v1055_v18 = vpop.f32.mrf.mxu1 }
 0xa93   :  { %v1064_v19 = vadd.f32 %v1055_v18, %v420_v15  ;;  %v2046_v18 = vld [vmem:[#allocation7 + $0x64] ss:$8 sps:$4 sm:$0xff]  }
 0xa94   :  { %v1057_v31 = vpop.f32.mrf.mxu1 }
 0xa95   :  { %v1867_v23 = vmul.f32 -1.442695, %v1064_v19  ;;  %v1078_v17 = vadd.f32 %v2534_v57, %v1057_v31  ;;  %v2044_v19 = vld [vmem:[#allocation7 + $0x60] ss:$8 sps:$4 sm:$0xff]   ;;  %v2049_v31 = vld [vmem:[#allocation7 + $0x54] ss:$8 sps:$4 sm:$0xff]  }
 0xa96   :  { %v1059_v24 = vpop.f32.mrf.mxu1 }
 0xa97   :  { %2142 = vpow2.f32 %v1867_v23  ;;  %v1065_v9 = vadd.f32 %v1059_v24, %v424_v11  ;;  %v2067_v23 = vld [vmem:[#allocation3 + $0x4] ss:$8 sps:$4 sm:$0xff]   ;;  %v2050_v24 = vld [vmem:[#allocation7 + $0x40] ss:$8 sps:$4 sm:$0xff]  }
 0xa98   :  { %v1061_v27 = vpop.f32.mrf.mxu1 }
 0xa99   :  { %v1868_v34 = vmul.f32 -1.442695, %v1065_v9  ;;  %v1079_v40 = vadd.f32 %v2534_v57, %v1061_v27  ;;  %v2055_v9 = vld [vmem:[#allocation7 + $0x34] ss:$8 sps:$4 sm:$0xff]   ;;  %v2062_v27 = vld [vmem:[#allocation7] ss:$8 sps:$4 sm:$0xff]  }
 0xa9b   :  { %2144 = vpow2.f32 %v1868_v34  ;;  %v2053_v34 = vld [vmem:[#allocation7 + $0x30] ss:$8 sps:$4 sm:$0xff]  }
 0xaa4   :  { %v2143_v12 = vpop.eup %2142 }
 0xaa5   :  { %v1072_v26 = vadd.f32 1.0, %v2143_v12  ;;  %v2058_v12 = vld [vmem:[#allocation7 + $0x24] ss:$8 sps:$4 sm:$0xff]  }
 0xaa7   :  { %2146 = vrcp.f32 %v1072_v26  ;;  %v2056_v26 = vld [vmem:[#allocation7 + $0x20] ss:$8 sps:$4 sm:$0xff]  }
 0xaa8   :  { %v2145_v14 = vpop.eup %2144 }
 0xaa9   :  { %v1073_v16 = vadd.f32 1.0, %v2145_v14  ;;  %v2061_v14 = vld [vmem:[#allocation7 + $0x14] ss:$8 sps:$4 sm:$0xff]  }
 0xaab   :  { %2148 = vrcp.f32 %v1073_v16  ;;  %v2059_v16 = vld [vmem:[#allocation7 + $0x10] ss:$8 sps:$4 sm:$0xff]  }
 0xab4   :  { %v2147_v20 = vpop.eup %2146 }
 0xab5   :  { %v1080_v22 = vmul.f32 %v2147_v20, %v1078_v17  ;;  %v1086_v51 = vsub.f32 1.0, %v2147_v20  ;;  %v1098_v55 = vmul.f32 %v2147_v20, %v2691_v5  ;;  %v436_v5 = vadd.f32 %v435_v4, %v2526_v38  ;;  %v2064_v17 = vld [vmem:[#allocation7 + $0x4] ss:$8 sps:$4 sm:$0xff]  }
 0xab6   :  { %v1310_v20 = vld [vmem:[#allocation7 + $0x80] sm:$0xff] }
 0xab7   :  { %v1082_v39 = vadd.f32 %v1080_v22, %v1011_v37  ;;  %476 = vst.msk [vmem:[#allocation2 + $0xd8] sm:$0xff] %vm449_vm2, %v436_v5  ;;  %v1894_v22 = vcombine.high %v1310_v20, %v1310_v20  ;;  %v1893_v37 = vcombine.low %v1310_v20, %v1310_v20 }
 0xab8   :  { %v2149_v41 = vpop.eup %2148 }
 0xab9   :  { %2150 = vtanh.f32 %v1082_v39  ;;  %v1081_v42 = vmul.f32 %v2149_v41, %v1079_v40  ;;  %v1087_v53 = vsub.f32 1.0, %v2149_v41  ;;  %v1099_v56 = vmul.f32 %v2149_v41, %v2693_v6  ;;  %v439_v6 = vpop.f32.mrf.mxu0  ;;  %v2069_v40 = vld [vmem:[#allocation3] ss:$8 sps:$4 sm:$0xff]  }
 0xaba   :  { %v2752_v7 = vadd.f32 %v439_v6, %v2522_v36  ;;  %v1421_v39 = vsel %vm328_vm1, %v1893_v37, 0 }
 0xabb   :  { %v1083_v44 = vadd.f32 %v1081_v42, %v1013_v43  ;;  %v441_v10 = vpop.f32.mrf.mxu0 }
 0xabc   :  { %v442_v15 = vadd.f32 %v441_v10, %v2526_v38 }
 0xabd   :  { %2152 = vtanh.f32 %v1083_v44  ;;  %v443_v21 = vpop.f32.mrf.mxu0 }
 0xabe   :  { %478 = vst.msk [vmem:[#allocation2 + $0xe8] sm:$0xff] %vm449_vm2, %v442_v15  ;;  %v2757_v25 = vadd.f32 %v443_v21, %v2522_v36  ;;  %v2047_v36 = vld [vmem:[#allocation7 + $0x50] ss:$8 sps:$4 sm:$0xff]  }
 0xabf   :  { %v445_v28 = vpop.f32.mrf.mxu0 }
 0xac0   :  { %v446_v11 = vadd.f32 %v445_v28, %v2526_v38  ;;  %v2052_v38 = vld [vmem:[#allocation7 + $0x44] ss:$8 sps:$4 sm:$0xff]  }
 0xac2   :  { %480 = vst.msk [vmem:[#allocation2 + $0xf8] sm:$0xff] %vm449_vm2, %v446_v11 }
 0xac6   :  { %v2151_v8 = vpop.eup %2150 }
 0xac7   :  { %1090 = vrot.lane.b32.xlu1 %v2151_v8, %s2291_s1 }
 0xaca   :  { %v2153_v48 = vpop.eup %2152 }
 0xacb   :  { %1092 = vrot.lane.b32.xlu0 %v2153_v48, %s2291_s1 }
 0xb39   :  { %v1091_v50 = vpop.permute.xlu1 %1090 }
 0xb3a   :  { %v1096_v52 = vmul.f32 %v1091_v50, %v1086_v51 }
 0xb3c   :  { %v2734_v59 = vadd.f32 %v1098_v55, %v1096_v52  ;;  %v1106_v55 = vld [vmem:[#allocation2 + $0xc8] sm:$0xff] }
 0xb3d   :  { %v1093_v54 = vpop.permute.xlu0 %1092 }
 0xb3e   :  { %v1097_v58 = vmul.f32 %v1093_v54, %v1087_v53 }
 0xb40   :  { %v2736_v60 = vadd.f32 %v1099_v56, %v1097_v58 }
 0xb42   :  { %v1109_v61 = vpack.c.bf16 %v2736_v60, %v2734_v59 }
 0xb44   :  { %1111 = vrot.lane.b32.xlu1 %v1109_v61, %s2291_s1 }
 0xbb6   :  { %v1112_v13 = vpop.permute.xlu1 %1111 }
 0xbb7   :  { %1869 = vmatmul.mubr.msk.bf16.vlgmr.msra.gmra.mxu0 %vm449_vm2, %v1112_v13 }
 0xbb8   :  { %1427 = vmatpush1.bf16.msra.mxu0 %v2041_v29  ;;  %1896 = vmatprep.mubr.msk.bf16.mxu0 %vm303_vm0, %v2067_v23 }
 0xbb9   :  { %1428 = vmatprep.subr.bf16.mxu0 %v2046_v18 }
 0xbbc   :  { %1429 = vmatpush1.bf16.msra.mxu0 %v2044_v19 }
 0xbbd   :  { %1430 = vmatprep.subr.bf16.mxu0 %v2049_v31 }
 0xbc0   :  { %1431 = vmatpush1.bf16.msra.mxu0 %v2047_v36 }
 0xbc1   :  { %1432 = vmatprep.subr.bf16.mxu0 %v2052_v38 }
 0xbc4   :  { %1433 = vmatpush1.bf16.msra.mxu0 %v2050_v24 }
 0xbc5   :  { %1434 = vmatprep.subr.bf16.mxu0 %v2055_v9 }
 0xbc8   :  { %1435 = vmatpush1.bf16.msra.mxu0 %v2053_v34 }
 0xbc9   :  { %1436 = vmatprep.subr.bf16.mxu0 %v2058_v12  ;;  %v1899_v12 = vld [vmem:[%s2880_s8] ss:$0 sm:$0xff] }
 0xbcc   :  { %1437 = vmatpush1.bf16.msra.mxu0 %v2056_v26 }
 0xbcd   :  { %1438 = vmatprep.subr.bf16.mxu0 %v2061_v14 }
 0xbd0   :  { %1439 = vmatpush1.bf16.msra.mxu0 %v2059_v16 }
 0xbd1   :  { %1440 = vmatprep.subr.bf16.mxu0 %v2064_v17 }
 0xbd4   :  { %1441 = vmatpush1.bf16.msra.mxu0 %v2062_v27 }
 0xbd5   :  { %1895 = vmatprep.subr.msk.bf16.mxu0 %vm328_vm1, %v1894_v22 }
 0xbd8   :  { %1457 = vmatpush2.bf16.msra.mxu0 %v1421_v39 }
 0xbdb   :  { %1459 = vmatmul.mubr.bf16.vlgmr.msra.gmra.mxu0 %v2069_v40 }
 0xc77   :  { %v1150_v41 = vpop.f32.mrf.mxu0 }
 0xc78   :  { %v1159_v42 = vadd.f32 %v1150_v41, %v2742_v62  ;;  %v1108_v62 = vld [vmem:[#allocation2 + $0xd8] sm:$0xff] }
 0xc79   :  { %v1152_v43 = vpop.f32.mrf.mxu0  ;;  %v2070_v41 = vld [vmem:[#allocation8 + $0x18] sm:$0xff]  }
 0xc7a   :  { %v1870_v44 = vmul.f32 -1.442695, %v1159_v42  ;;  %v1173_v51 = vadd.f32 %v2534_v57, %v1152_v43  ;;  %v2294_v42 = vmov 0.0   ;;  %v2071_v43 = vld [vmem:[#allocation8 + $0x10] sm:$0xff]  }
 0xc7b   :  { %v1154_v45 = vpop.f32.mrf.mxu0  ;;  %1932 = vmatprep.subr.bf16.mxu1 %v2294_v42  ;;  %1956 = vmatprep.subr.bf16.mxu0 %v2294_v42 }
 0xc7c   :  { %2154 = vpow2.f32 %v1870_v44  ;;  %v1160_v46 = vadd.f32 %v1154_v45, %v2747_v3  ;;  %v1311_v3 = vld [vmem:[%s2879_s7] sm:$0x3]  ;;  %v2072_v44 = vld [vmem:[#allocation8 + $0x8] sm:$0xff]   ;;  %1964 = vmatprep.mubr.msk.bf16.mxu0 %vm2295_vm3, %v2294_v42 }
 0xc7d   :  { %v1156_v53 = vpop.f32.mrf.mxu0 }
 0xc7e   :  { %v1871_v47 = vmul.f32 -1.442695, %v1160_v46  ;;  %v1174_v58 = vadd.f32 %v2534_v57, %v1156_v53  ;;  %v1316_v57 = vrot.slane %v1311_v3, %v138_v33 }
 0xc80   :  { %2156 = vpow2.f32 %v1871_v47 }
 0xc89   :  { %v2155_v8 = vpop.eup %2154 }
 0xc8a   :  { %v1167_v48 = vadd.f32 1.0, %v2155_v8 }
 0xc8c   :  { %2158 = vrcp.f32 %v1167_v48 }
 0xc8d   :  { %v2157_v49 = vpop.eup %2156 }
 0xc8e   :  { %v1168_v50 = vadd.f32 1.0, %v2157_v49 }
 0xc90   :  { %2160 = vrcp.f32 %v1168_v50 }
 0xc99   :  { %v2159_v52 = vpop.eup %2158 }
 0xc9a   :  { %v1175_v54 = vmul.f32 %v2159_v52, %v1173_v51  ;;  %v1181_v10 = vsub.f32 1.0, %v2159_v52  ;;  %v1193_v30 = vmul.f32 %v2159_v52, %v2734_v59 }
 0xc9b   :  { %v1460_v4 = vpop.f32.mrf.mxu0 }
 0xc9c   :  { %v1177_v56 = vadd.f32 %v1175_v54, %v1106_v55  ;;  %v1461_v15 = vadd.f32 %v1460_v4, %v1316_v57  ;;  %v2198_v55 = vld [vmem:[#allocation5] ss:$0 sm:$0xff] }
 0xc9d   :  { %v2161_v61 = vpop.eup %2160  ;;  %v1462_v6 = vpop.f32.mrf.mxu0 }
 0xc9e   :  { %2162 = vtanh.f32 %v1177_v56  ;;  %v1176_v0 = vmul.f32 %v2161_v61, %v1174_v58  ;;  %v1182_v11 = vsub.f32 1.0, %v2161_v61  ;;  %v1897_v13 = vmul.f32 -1.442695, %v1461_v15 }
 0xc9f   :  { %v1464_v21 = vpop.f32.mrf.mxu0  ;;  %v1194_v19 = vmul.f32 %v2161_v61, %v2736_v60  ;;  %v1320_v60 = vrot.slane %v1311_v3, %v142_v35  ;;  %v1203_v3 = vld [vmem:[#allocation2 + $0xf8] sm:$0xff] }
 0xca0   :  { %v1178_v63 = vadd.f32 %v1176_v0, %v1108_v62  ;;  %v1465_v29 = vadd.f32 %v1464_v21, %v1316_v57 }
 0xca1   :  { %v1466_v26 = vpop.f32.mrf.mxu0  ;;  %v1463_v14 = vadd.f32 %v1462_v6, %v1320_v60 }
 0xca2   :  { %2164 = vtanh.f32 %v1178_v63  ;;  %v1898_v23 = vmul.f32 -1.442695, %v1465_v29  ;;  %v1467_v20 = vadd.f32 %v1466_v26, %v1320_v60 }
 0xca3   :  { %2166 = vpow2.f32 %v1897_v13 }
 0xca4   :  { %2168 = vpow2.f32 %v1898_v23 }
 0xcab   :  { %v2163_v1 = vpop.eup %2162 }
 0xcac   :  { %1185 = vrot.lane.b32.xlu0 %v2163_v1, %s2291_s1 }
 0xcaf   :  { %v2165_v2 = vpop.eup %2164 }
 0xcb0   :  { %1187 = vrot.lane.b32.xlu1 %v2165_v2, %s2291_s1  ;;  %v2167_v24 = vpop.eup %2166 }
 0xcb1   :  { %v1475_v9 = vadd.f32 1.0, %v2167_v24  ;;  %v2169_v34 = vpop.eup %2168 }
 0xcb2   :  { %v1476_v59 = vadd.f32 1.0, %v2169_v34 }
 0xcb3   :  { %2170 = vrcp.f32 %v1475_v9 }
 0xcb4   :  { %2172 = vrcp.f32 %v1476_v59  ;;  %v2075_v59 = vld [vmem:[%s2881_s9 + $0x10] sm:$0xff]  }
 0xcc0   :  { %v2790_v16 = vpop.eup %2170 }
 0xcc1   :  { %v1488_v17 = vmul.f32 %v2790_v16, %v1899_v12  ;;  %v2793_v27 = vpop.eup %2172 }
 0xcc2   :  { %v1489_v37 = vmul.f32 %v2793_v27, %v1899_v12  ;;  %v1495_v57 = vsub.f32 1.0, %v2793_v27 }
 0xcc3   :  { %v1490_v22 = vadd.f32 %v1488_v17, %v1463_v14  ;;  %v2078_v14 = vld [vmem:[%s2884_s12 + $0x18] sm:$0xff]   ;;  %v2079_v17 = vld [vmem:[%s2884_s12 + $0x10] sm:$0xff]  }
 0xcc4   :  { %v1491_v39 = vadd.f32 %v1489_v37, %v1467_v20  ;;  %1957 = vmatpush3.bf16.msra.mxu0 %v2078_v14  ;;  %v2080_v20 = vld [vmem:[%s2884_s12 + $0x8] sm:$0xff]  }
 0xcc5   :  { %2174 = vtanh.f32 %v1490_v22  ;;  %1958 = vmatprep.subr.bf16.mxu0 %v2294_v42  ;;  %v2081_v22 = vld [vmem:[%s2884_s12] sm:$0xff]  }
 0xcc6   :  { %2176 = vtanh.f32 %v1491_v39 }
 0xcc8   :  { %1959 = vmatpush3.bf16.msra.mxu0 %v2079_v17 }
 0xcc9   :  { %1960 = vmatprep.subr.bf16.mxu0 %v2294_v42 }
 0xccc   :  { %1961 = vmatpush3.bf16.msra.mxu0 %v2080_v20 }
 0xccd   :  { %1962 = vmatprep.subr.bf16.mxu0 %v2294_v42 }
 0xcd0   :  { %1963 = vmatpush3.bf16.msra.mxu0 %v2081_v22 }
 0xcd2   :  { %v2175_v32 = vpop.eup %2174 }
 0xcd3   :  { %1498 = vrot.lane.b32.xlu1 %v2175_v32, %s2291_s1  ;;  %v2177_v35 = vpop.eup %2176 }
 0xd1e   :  { %v1186_v5 = vpop.permute.xlu0 %1185 }
 0xd1f   :  { %v1191_v28 = vmul.f32 %v1186_v5, %v1181_v10  ;;  %v1494_v5 = vsub.f32 1.0, %v2790_v16 }
 0xd21   :  { %v2778_v36 = vadd.f32 %v1193_v30, %v1191_v28 }
 0xd22   :  { %v1188_v18 = vpop.permute.xlu1 %1187 }
 0xd23   :  { %v1192_v31 = vmul.f32 %v1188_v18, %v1182_v11  ;;  %v2074_v18 = vld [vmem:[%s2881_s9 + $0x18] sm:$0xff]  }
 0xd25   :  { %v2780_v33 = vadd.f32 %v1194_v19, %v1192_v31 }
 0xd27   :  { %v1204_v38 = vpack.c.bf16 %v2780_v33, %v2778_v36 }
 0xd29   :  { %1206 = vrot.lane.b32.xlu0 %v1204_v38, %s2291_s1 }
 0xd2d   :  { %1500 = vrot.lane.b32.xlu0 %v2177_v35, %s2291_s1 }
 0xd45   :  { %v1499_v10 = vpop.permute.xlu1 %1498 }
 0xd46   :  { %v1504_v21 = vmul.f32 %v1499_v10, %v1494_v5 }
 0xd9b   :  { %v1207_v40 = vpop.permute.xlu0 %1206 }
 0xd9c   :  { %1872 = vmatmul.mubr.msk.bf16.vlgmr.msra.gmra.mxu1 %vm449_vm2, %v1207_v40 }
 0xd9d   :  { %1933 = vmatpush3.bf16.msra.mxu1 %v2070_v41  ;;  %1940 = vmatprep.mubr.msk.bf16.mxu1 %vm2295_vm3, %v2294_v42  ;;  %v1910_v41 = vld [vmem:[%s2883_s11] ss:$0 sm:$0xff] }
 0xd9e   :  { %1934 = vmatprep.subr.bf16.mxu1 %v2294_v42 }
 0xd9f   :  { %v1501_v6 = vpop.permute.xlu0 %1500 }
 0xda0   :  { %v1505_v15 = vmul.f32 %v1501_v6, %v1495_v57 }
 0xda1   :  { %1935 = vmatpush3.bf16.msra.mxu1 %v2071_v43 }
 0xda2   :  { %1936 = vmatprep.subr.bf16.mxu1 %v2294_v42  ;;  %v1515_v11 = vpack.c.bf16 %v1505_v15, %v1504_v21 }
 0xda5   :  { %1937 = vmatpush3.bf16.msra.mxu1 %v2072_v44 }
 0xda6   :  { %1938 = vmatprep.subr.bf16.mxu1 %v2294_v42 }
 0xe5c   :  { %v1245_v45 = vpop.f32.mrf.mxu1 }
 0xe5d   :  { %v1254_v46 = vadd.f32 %v1245_v45, %v2752_v7  ;;  %v1201_v7 = vld [vmem:[#allocation2 + $0xe8] sm:$0xff] }
 0xe5e   :  { %v1247_v47 = vpop.f32.mrf.mxu1 }
 0xe5f   :  { %v1873_v8 = vmul.f32 -1.442695, %v1254_v46  ;;  %v1268_v56 = vadd.f32 %v2198_v55, %v1247_v47 }
 0xe60   :  { %v1249_v48 = vpop.f32.mrf.mxu1 }
 0xe61   :  { %2178 = vpow2.f32 %v1873_v8  ;;  %v1255_v49 = vadd.f32 %v1249_v48, %v2757_v25  ;;  %v2073_v25 = vld [vmem:[#allocation8] sm:$0xff]  }
 0xe62   :  { %v1251_v61 = vpop.f32.mrf.mxu1  ;;  %1939 = vmatpush3.bf16.msra.mxu1 %v2073_v25 }
 0xe63   :  { %v1874_v50 = vmul.f32 -1.442695, %v1255_v49  ;;  %v1269_v63 = vadd.f32 %v2198_v55, %v1251_v61  ;;  %1944 = vmatprep.subr.bf16.mxu1 %v2294_v42 }
 0xe65   :  { %2180 = vpow2.f32 %v1874_v50  ;;  %v1911_v50 = vld [vmem:[%s2885_s13] ss:$0 sm:$0xff] }
 0xe6e   :  { %v2179_v51 = vpop.eup %2178 }
 0xe6f   :  { %v1262_v52 = vadd.f32 1.0, %v2179_v51 }
 0xe71   :  { %2182 = vrcp.f32 %v1262_v52 }
 0xe72   :  { %v2181_v53 = vpop.eup %2180 }
 0xe73   :  { %v1263_v54 = vadd.f32 1.0, %v2181_v53 }
 0xe75   :  { %2184 = vrcp.f32 %v1263_v54 }
 0xe7e   :  { %v2183_v58 = vpop.eup %2182 }
 0xe7f   :  { %v1270_v0 = vmul.f32 %v2183_v58, %v1268_v56  ;;  %v1276_v30 = vsub.f32 1.0, %v2183_v58  ;;  %v1288_v24 = vmul.f32 %v2183_v58, %v2778_v36  ;;  %v2076_v36 = vld [vmem:[%s2881_s9 + $0x8] sm:$0xff]  }
 0xe81   :  { %v1272_v62 = vadd.f32 %v1270_v0, %v1201_v7 }
 0xe82   :  { %v2185_v1 = vpop.eup %2184 }
 0xe83   :  { %2186 = vtanh.f32 %v1272_v62  ;;  %v1271_v2 = vmul.f32 %v2185_v1, %v1269_v63  ;;  %v1277_v31 = vsub.f32 1.0, %v2185_v1  ;;  %v1289_v9 = vmul.f32 %v2185_v1, %v2780_v33  ;;  %v2077_v33 = vld [vmem:[%s2881_s9] sm:$0xff]  }
 0xe85   :  { %v1273_v4 = vadd.f32 %v1271_v2, %v1203_v3 }
 0xe87   :  { %2188 = vtanh.f32 %v1273_v4 }
 0xe90   :  { %v2187_v28 = vpop.eup %2186 }
 0xe91   :  { %1280 = vrot.lane.b32.xlu1 %v2187_v28, %s2291_s1 }
 0xe94   :  { %v2189_v13 = vpop.eup %2188 }
 0xe95   :  { %1282 = vrot.lane.b32.xlu0 %v2189_v13, %s2291_s1  ;;  %1525 = vrot.lane.b32.xlu1 %v1515_v11, %s2291_s1 }
 0xf03   :  { %v1281_v29 = vpop.permute.xlu1 %1280 }
 0xf04   :  { %v1286_v19 = vmul.f32 %v1281_v29, %v1276_v30 }
 0xf06   :  { %v1290_v60 = vadd.f32 %v1288_v24, %v1286_v19 }
 0xf07   :  { %v1283_v23 = vpop.permute.xlu0 %1282  ;;  %v1526_v38 = vpop.permute.xlu1 %1525 }
 0xf08   :  { %v1287_v34 = vmul.f32 %v1283_v23, %v1277_v31  ;;  %1941 = vmatmul.mubr.msk.bf16.vlgmr.msra.gmra.mxu1 %vm449_vm2, %v1526_v38 }
 0xf09   :  { %1945 = vmatpush3.bf16.msra.mxu1 %v2074_v18  ;;  %1952 = vmatprep.mubr.msk.bf16.mxu1 %vm2295_vm3, %v2294_v42 }
 0xf0a   :  { %v1291_v12 = vadd.f32 %v1289_v9, %v1287_v34  ;;  %1946 = vmatprep.subr.bf16.mxu1 %v2294_v42 }
 0xf0c   :  { %v1506_v26 = vpack.c.bf16 %v1291_v12, %v1290_v60 }
 0xf0d   :  { %1947 = vmatpush3.bf16.msra.mxu1 %v2075_v59 }
 0xf0e   :  { %1596 = vrot.lane.b32.xlu0 %v1506_v26, %s2291_s1  ;;  %1948 = vmatprep.subr.bf16.mxu1 %v2294_v42 }
 0xf11   :  { %1949 = vmatpush3.bf16.msra.mxu1 %v2076_v36 }
 0xf12   :  { %1950 = vmatprep.subr.bf16.mxu1 %v2294_v42 }
 0xf15   :  { %1951 = vmatpush3.bf16.msra.mxu1 %v2077_v33 }
 0xf80   :  { %v1597_v16 = vpop.permute.xlu0 %1596 }
 0xf81   :  { %1953 = vmatmul.mubr.msk.bf16.vlgmr.msra.gmra.mxu1 %vm449_vm2, %v1597_v16 }
 0xfc8   :  { %v1588_v27 = vpop.f32.mrf.mxu1 }
 0xfca   :  { %v1942_v37 = vpop.f32.mrf.mxu1 }
 0xfcc   :  { %v1591_v39 = vpop.f32.mrf.mxu1 }
 0xfce   :  { %v1943_v32 = vpop.f32.mrf.mxu1 }
0x1041   :  { %v1659_v35 = vpop.f32.mrf.mxu1 }
0x1042   :  { %v1660_v40 = vadd.f32 %v1659_v35, %v1588_v27 }
0x1043   :  { %v1954_v43 = vpop.f32.mrf.mxu1 }
0x1044   :  { %v1673_v45 = vadd.f32 %v1910_v41, %v1660_v40 }
0x1045   :  { %v1662_v44 = vpop.f32.mrf.mxu1 }
0x1046   :  { %v1663_v46 = vadd.f32 %v1662_v44, %v1591_v39  ;;  %v1675_v8 = vmax.f32 %v1673_v45, 0.0 }
0x1047   :  { %v1955_v47 = vpop.f32.mrf.mxu1 }
0x1048   :  { %v1674_v42 = vadd.f32 %v1910_v41, %v1663_v46 }
0x104a   :  { %v1676_v48 = vmax.f32 %v1674_v42, 0.0 }
0x104c   :  { %v1677_v49 = vpack.c.bf16 %v1676_v48, %v1675_v8 }
0x104e   :  { %1965 = vmatmul.mubr.msk.bf16.vlgmr.msra.gmra.mxu0 %vm449_vm2, %v1677_v49 }
0x110e   :  { %v1754_v51 = vpop.f32.mrf.mxu0 }
0x110f   :  { %v1755_v52 = vadd.f32 %v1911_v50, %v1754_v51 }
0x1110   :  { %v1966_v53 = vpop.f32.mrf.mxu0 }
0x1111   :  { %v1762_v54 = vsel %vm1761_vm4, %v1755_v52, -inf }
0x1112   :  { %1763 = vmax.xlane.f32.xlu1 %v1762_v54  ;;  %v1757_v55 = vpop.f32.mrf.mxu0 }
0x1113   :  { %v1758_v56 = vadd.f32 %v1911_v50, %v1757_v55 }
0x1114   :  { %v1967_v58 = vpop.f32.mrf.mxu0 }
0x1115   :  { %v1765_v61 = vsel %vm1761_vm4, %v1758_v56, -inf }
0x1116   :  { %1766 = vmax.xlane.f32.xlu0 %v1765_v61 }
0x119b   :  { %v1764_v0 = vpop.xlane.xlu1 %1763 }
0x119c   :  { %v1768_v7 = vsub.f32 %v1755_v52, %v1764_v0 }
0x119e   :  { %v1770_v62 = vmul.f32 1.442695, %v1768_v7 }
0x119f   :  { %v1767_v63 = vpop.xlane.xlu0 %1766 }
0x11a0   :  { %2190 = vpow2.f32 %v1770_v62  ;;  %v1769_v1 = vsub.f32 %v1758_v56, %v1767_v63 }
0x11a2   :  { %v1772_v2 = vmul.f32 1.442695, %v1769_v1 }
0x11a4   :  { %2192 = vpow2.f32 %v1772_v2 }
0x11ad   :  { %v2191_v25 = vpop.eup %2190 }
0x11ae   :  { %v1774_v3 = vsel %vm1761_vm4, %v2191_v25, 0.0 }
0x11af   :  { %1775 = vadd.xlane.f32.xlu0 %v1774_v3 }
0x11b1   :  { %v2193_v4 = vpop.eup %2192 }
0x11b2   :  { %v1777_v57 = vsel %vm1761_vm4, %v2193_v4, 0.0 }
0x11b3   :  { %1778 = vadd.xlane.f32.xlu1 %v1777_v57 }
0x1238   :  { %v1776_v5 = vpop.xlane.xlu0 %1775 }
0x1239   :  { %2194 = vrcp.f32 %v1776_v5 }
0x123c   :  { %v1779_v6 = vpop.xlane.xlu1 %1778 }
0x123d   :  { %2196 = vrcp.f32 %v1779_v6 }
0x1246   :  { %v2195_v10 = vpop.eup %2194 }
0x1247   :  { %v1782_v15 = vmul.f32 %v2195_v10, %v2191_v25 }
0x1249   :  { %1784 = vst.msk [vmem:[%s2886_s14] sm:$0xff] %vm1761_vm4, %v1782_v15 }
0x124a   :  { %v2197_v21 = vpop.eup %2196 }
0x124b   :  { %v1783_v28 = vmul.f32 %v2197_v21, %v2193_v4 }
0x124d   :  { %1785 = vst.msk [vmem:[%s2886_s14 + $0x8] sm:$0xff] %vm1761_vm4, %v1783_v28 }
0x124e   :  { %1790 = vsyncpa [#allocation4], 1 }
0x124f   :  { %1791 = vsyncpa [#allocation6], 1 }
0x1250   :  { %1792 = vsyncpa [#allocation9], 1 }

</bundles_post_ra>
